<compile_context>
chip_gen: v7x
topology: tpu7x:2x2x1
jax: 0.10.0
libtpu: 0.0.40
codegen_flags: <defaults>
</compile_context>

<pallas_src>
import jax
import jax.numpy as jnp
from jax.experimental import pallas as pl
from jax.experimental.pallas import tpu as pltpu

MXU_DTYPE = jnp.bfloat16            # jnp.float32 => exact parity with f32 ref
_BN_EPS = 1e-5
_BN_SCALE = 1.0 / (1.0 + _BN_EPS) ** 0.5   # eval-mode BN with default stats


def _r8(c):                          # pad channels to the f32 sublane tile
    return ((c + 7) // 8) * 8


def _rlane(n):                       # pad flattened spatial to the lane width
    return ((n + 127) // 128) * 128


# ----------------------------------------------------------------------------
# Host-side constants: per-resolution tap masks and stride-selection matrices
# ----------------------------------------------------------------------------
def _tap_masks(H, W):
    """(9, rlane(H*W)) f32 validity mask for each 3x3 tap (zero-padded conv)."""
    L = _rlane(H * W)
    q = jnp.arange(L)
    i, j = q // W, q % W
    real = q < H * W
    rows = []
    for dh in (-1, 0, 1):
        for dw in (-1, 0, 1):
            ok = real
            if dh == -1:
                ok = ok & (i > 0)
            if dh == 1:
                ok = ok & (i < H - 1)
            if dw == -1:
                ok = ok & (j > 0)
            if dw == 1:
                ok = ok & (j < W - 1)
            rows.append(ok.astype(jnp.float32))
    return jnp.stack(rows, axis=0)


def _sel_matrix(H, W, s):
    """Exact 0/1 (rlane(H*W), rlane(Ho*Wo)) matrix selecting the stride-s grid."""
    Ho, Wo = H // s, W // s
    Lin, Lout = _rlane(H * W), _rlane(Ho * Wo)
    q = jnp.arange(Lout)
    src = jnp.where(q < Ho * Wo, (q // Wo) * (s * W) + (q % Wo) * s, -1)
    sel = (jnp.arange(Lin)[:, None] == src[None, :]).astype(jnp.float32)
    return sel.astype(MXU_DTYPE)     # 0/1 => exact in bf16


# ----------------------------------------------------------------------------
# Parameter init (deterministic, synthetic; BN scale folded, channels padded)
# ----------------------------------------------------------------------------
def key_stream(seed):
    key = jax.random.PRNGKey(seed)
    while True:
        key, sub = jax.random.split(key)
        yield sub


def init_conv3x3(key, cin, cout):
    fan_in = cin * 9
    w = jax.random.normal(key, (3, 3, cin, cout), jnp.float32)
    w = w * (2.0 / fan_in) ** 0.5 * _BN_SCALE
    cin_p, cout_p = _r8(cin), _r8(cout)
    wp = jnp.zeros((3, 3, cin_p, cout_p), jnp.float32).at[:, :, :cin, :cout].set(w)
    w2d = jnp.transpose(wp.reshape(9, cin_p, cout_p), (2, 0, 1)).reshape(cout_p, 9 * cin_p)
    return {"w": w2d.astype(MXU_DTYPE), "b": jnp.zeros((cout_p, 1), jnp.float32)}


def init_conv1x1(key, cin, cout):
    w = jax.random.normal(key, (cin, cout), jnp.float32) * (2.0 / cin) ** 0.5 * _BN_SCALE
    wp = jnp.zeros((_r8(cin), _r8(cout)), jnp.float32).at[:cin, :cout].set(w)
    return {"w": jnp.transpose(wp).astype(MXU_DTYPE),
            "b": jnp.zeros((_r8(cout), 1), jnp.float32)}


def init_root(key, branch_channels, cout):
    root_dim = sum(branch_channels)
    w = jax.random.normal(key, (root_dim, cout), jnp.float32)
    w = w * (2.0 / root_dim) ** 0.5 * _BN_SCALE
    cout_p = _r8(cout)
    chunks, off = [], 0
    for c in branch_channels:        # per-branch zero padding of the concat dim
        chunk = jnp.zeros((_r8(c), cout_p), jnp.float32).at[:c, :cout].set(w[off:off + c])
        chunks.append(chunk)
        off += c
    wp = jnp.concatenate(chunks, axis=0)
    return {"w": jnp.transpose(wp).astype(MXU_DTYPE),
            "b": jnp.zeros((cout_p, 1), jnp.float32)}


def dla_res_block_init(keygen, in_c, out_c, stride):
    project = in_c != out_c
    arrays = {"conv1": init_conv3x3(next(keygen), in_c, out_c),
              "conv2": init_conv3x3(next(keygen), out_c, out_c)}
    if project:
        arrays["project"] = init_conv1x1(next(keygen), in_c, out_c)
    spec = dict(kind="block", in_c=in_c, out_c=out_c, stride=stride, project=project)
    return arrays, spec


def dla_tree_init(keygen, levels, in_c, out_c, stride, root_residual,
                  root_dim=0, first_tree=False, input_level=True, extra_channels=None):
    extra_channels = [] if extra_channels is None else list(extra_channels)
    add_down = input_level and (not first_tree)
    root_level = levels == 1
    if root_dim == 0:
        root_dim = 2 * out_c
    if add_down:
        root_dim += in_c
        extra_channels = extra_channels + [in_c]           # `down` branch
    arrays = {}
    spec = dict(kind="tree", add_down=add_down, root_level=root_level,
                root_residual=root_residual, stride=stride, in_c=in_c, out_c=out_c)
    if root_level:
        arrays["tree1"], spec["tree1"] = dla_res_block_init(keygen, in_c, out_c, stride)
        arrays["tree2"], spec["tree2"] = dla_res_block_init(keygen, out_c, out_c, 1)
        branch_channels = [out_c, out_c] + extra_channels   # concat order (x2, x1, *extra)
        assert sum(branch_channels) == root_dim
        arrays["root"] = init_root(next(keygen), branch_channels, out_c)
    else:
        arrays["tree1"], spec["tree1"] = dla_tree_init(
            keygen, levels - 1, in_c, out_c, stride, root_residual,
            0, False, False, None)
        arrays["tree2"], spec["tree2"] = dla_tree_init(
            keygen, levels - 1, out_c, out_c, 1, root_residual,
            root_dim + out_c, False, False, extra_channels + [out_c])
    return arrays, spec


# ----------------------------------------------------------------------------
# In-kernel emitters (trace the whole tree inside ONE pallas_call body)
# ----------------------------------------------------------------------------
def _emit_conv3x3(x, w, W_img, masks9):
    """3x3 conv (padding=1, stride=1) as ONE MXU matmul.  x: (cin_p, L) f32."""
    L = x.shape[1]
    taps, t = [], 0
    for dh in (-1, 0, 1):
        for dw in (-1, 0, 1):
            sft = dh * W_img + dw
            v = x if sft == 0 else pltpu.roll(x, (-sft) % L, axis=1)
            if sft != 0:                       # masking folded into im2col build
                v = v * masks9[t:t + 1, :]
            taps.append(v)
            t += 1
    patches = jnp.concatenate(taps, axis=0)    # (9*cin_p, L), sublane-aligned
    return jnp.dot(w, patches.astype(MXU_DTYPE), preferred_element_type=jnp.float32)


def _emit_conv1x1(x, w, b):
    return jnp.dot(w, x.astype(MXU_DTYPE), preferred_element_type=jnp.float32) + b


def _emit_res_block(x, p, spec, H, W, masks, sels):
    s = spec["stride"]
    Ho, Wo = H // s, W // s
    # body: conv3x3 (+BN folded, stride s) + ReLU -> conv3x3 (+BN folded)
    z = _emit_conv3x3(x, p["conv1"]["w"], W, masks[(H, W)])
    if s > 1:
        selT = sels[(H, W, s)]                 # exact 0/1 stride-s selection
        z = jnp.dot(z.astype(MXU_DTYPE), selT, preferred_element_type=jnp.float32)
    z = jnp.maximum(z + p["conv1"]["b"], 0.0)
    z = _emit_conv3x3(z, p["conv2"]["w"], Wo, masks[(Ho, Wo)]) + p["conv2"]["b"]
    # identity branch: (maxpool sxs / s) -> (1x1 projection)
    if s > 1:
        pooled = x
        for di in range(s):
            for dj in range(s):
                if di == 0 and dj == 0:
                    continue
                pooled = jnp.maximum(
                    pooled, pltpu.roll(x, (-(di * W + dj)) % x.shape[1], axis=1))
        down = jnp.dot(pooled.astype(MXU_DTYPE), selT, preferred_element_type=jnp.float32)
    else:
        down = x
    identity = (_emit_conv1x1(down, p["project"]["w"], p["project"]["b"])
                if spec["project"] else down)
    return jnp.maximum(z + identity, 0.0), down, Ho, Wo


def _emit_root(x2, x1, extra, p, residual):
    cat = jnp.concatenate([x2, x1] + list(extra), axis=0)   # concat-in-VMEM only
    z = jnp.dot(p["w"], cat.astype(MXU_DTYPE), preferred_element_type=jnp.float32)
    z = z + p["b"]
    if residual:
        z = z + x2                       # last_branch = x2 (reference semantics)
    return jnp.maximum(z, 0.0)


def _emit_tree(x, p, spec, H, W, masks, sels, extra=None):
    extra = [] if extra is None else extra
    if spec["root_level"]:
        x1, down, Ho, Wo = _emit_res_block(x, p["tree1"], spec["tree1"], H, W, masks, sels)
    else:
        x1, down, Ho, Wo = _emit_tree(x, p["tree1"], spec["tree1"], H, W, masks, sels, None)
    if spec["add_down"]:
        extra.append(down)
    if spec["root_level"]:
        x2, _, _, _ = _emit_res_block(x1, p["tree2"], spec["tree2"], Ho, Wo, masks, sels)
        out = _emit_root(x2, x1, extra, p["root"], spec["root_residual"])
    else:
        extra.append(x1)
        out, _, _, _ = _emit_tree(x1, p["tree2"], spec["tree2"], Ho, Wo, masks, sels, extra)
    return out, down, Ho, Wo


# ----------------------------------------------------------------------------
# Resolution / selection-matrix discovery and the single pallas_call wrapper
# ----------------------------------------------------------------------------
def _walk_resolutions(spec, H, W, res_set, sel_set):
    if spec["kind"] == "block":
        s = spec["stride"]
        res_set.add((H, W))
        Ho, Wo = H // s, W // s
        res_set.add((Ho, Wo))
        if s > 1:
            sel_set.add((H, W, s))
        return Ho, Wo
    Ho, Wo = _walk_resolutions(spec["tree1"], H, W, res_set, sel_set)
    return _walk_resolutions(spec["tree2"], Ho, Wo, res_set, sel_set)


def build_dla_tree_forward(params, spec, H, W):
    in_c, out_c = spec["in_c"], spec["out_c"]
    cin_p, cout_p = _r8(in_c), _r8(out_c)
    res_set, sel_set = set(), set()
    Ho, Wo = _walk_resolutions(spec, H, W, res_set, sel_set)
    res_keys, sel_keys = sorted(res_set), sorted(sel_set)
    mask_consts = [_tap_masks(h, w) for (h, w) in res_keys]
    sel_consts = [_sel_matrix(h, w, s) for (h, w, s) in sel_keys]
    leaves, treedef = jax.tree_util.tree_flatten(params)
    n_m, n_s, n_l = len(mask_consts), len(sel_consts), len(leaves)
    Lin, Lout = _rlane(H * W), _rlane(Ho * Wo)

    def kernel(*refs):
        x_ref = refs[0]
        mask_refs = refs[1:1 + n_m]
        sel_refs = refs[1 + n_m:1 + n_m + n_s]
        leaf_refs = refs[1 + n_m + n_s:1 + n_m + n_s + n_l]
        out_ref = refs[1 + n_m + n_s + n_l]
        masks = {k: mask_refs[i][...] for i, k in enumerate(res_keys)}
        sels = {k: sel_refs[i][...] for i, k in enumerate(sel_keys)}
        p = jax.tree_util.tree_unflatten(treedef, [r[...] for r in leaf_refs])
        out, _, _, _ = _emit_tree(x_ref[0], p, spec, H, W, masks, sels)
        out_ref[0] = out.astype(out_ref.dtype)

    def _full_spec(a):
        nd = a.ndim
        return pl.BlockSpec(tuple(a.shape), lambda b, _nd=nd: (0,) * _nd)

    def forward(x_nchw):
        N = x_nchw.shape[0]
        x = x_nchw.reshape(N, in_c, H * W)                  # NCHW is already C-major
        if cin_p != in_c or Lin != H * W:
            x = jnp.pad(x, ((0, 0), (0, cin_p - in_c), (0, Lin - H * W)))
        in_specs = [pl.BlockSpec((1, cin_p, Lin), lambda b: (b, 0, 0))]
        in_specs += [_full_spec(a) for a in (mask_consts + sel_consts + leaves)]
        out = pl.pallas_call(
            kernel,
            grid=(N,),                                       # batch -> 2 TCs on v7x
            in_specs=in_specs,
            out_specs=pl.BlockSpec((1, cout_p, Lout), lambda b: (b, 0, 0)),
            out_shape=jax.ShapeDtypeStruct((N, cout_p, Lout), jnp.float32),
            compiler_params=pltpu.CompilerParams(
                dimension_semantics=("parallel",),
                vmem_limit_bytes=32 * 1024 * 1024),
        )(x, *mask_consts, *sel_consts, *leaves)
        out = out[:, :out_c, :Ho * Wo]
        return out.reshape(N, out_c, Ho, Wo)

    return forward


# ----------------------------------------------------------------------------
if __name__ == "__main__":
    # DLATree(levels=2, in_channels=4, out_channels=8, res_body_class=ResBlock,
    #         stride=2, root_residual=True)
    levels, in_c, out_c, stride = 2, 4, 8, 2
    root_residual = True
    H = W = 16
    N = 2

    keygen = key_stream(0)
    params, spec = dla_tree_init(keygen, levels, in_c, out_c, stride, root_residual)

    x = jax.random.normal(jax.random.PRNGKey(0), (N, in_c, H, W), jnp.float32)

    # TODO(synk): BatchNorm uses eval-mode running statistics folded into the
    # conv weights; training-mode batch-statistics are not computed.
    forward = build_dla_tree_forward(params, spec, H, W)
    fwd = jax.jit(forward)
    out = jax.block_until_ready(fwd(x))
    assert out.shape == (N, out_c, H // stride, W // stride), out.shape
    assert bool(jnp.all(jnp.isfinite(out)))
    print("KERNEL_OK")
</pallas_src>

<mosaic_0001>
module attributes {stable_mosaic.version = 11 : i64} {
  func.func @kernel(%arg0: i32, %arg1: memref<1x8x256xf32, #tpu.memory_space<vmem>>, %arg2: memref<9x128xf32, #tpu.memory_space<vmem>>, %arg3: memref<9x256xf32, #tpu.memory_space<vmem>>, %arg4: memref<256x128xbf16, #tpu.memory_space<vmem>>, %arg5: memref<8x1xf32, #tpu.memory_space<vmem>>, %arg6: memref<8x16xbf16, #tpu.memory_space<vmem>>, %arg7: memref<8x1xf32, #tpu.memory_space<vmem>>, %arg8: memref<8x72xbf16, #tpu.memory_space<vmem>>, %arg9: memref<8x1xf32, #tpu.memory_space<vmem>>, %arg10: memref<8x72xbf16, #tpu.memory_space<vmem>>, %arg11: memref<8x1xf32, #tpu.memory_space<vmem>>, %arg12: memref<8x8xbf16, #tpu.memory_space<vmem>>, %arg13: memref<8x1xf32, #tpu.memory_space<vmem>>, %arg14: memref<8x72xbf16, #tpu.memory_space<vmem>>, %arg15: memref<8x1xf32, #tpu.memory_space<vmem>>, %arg16: memref<8x72xbf16, #tpu.memory_space<vmem>>, %arg17: memref<8x1xf32, #tpu.memory_space<vmem>>, %arg18: memref<8x32xbf16, #tpu.memory_space<vmem>>, %arg19: memref<8x1xf32, #tpu.memory_space<vmem>>, %arg20: memref<8x72xbf16, #tpu.memory_space<vmem>>, %arg21: memref<8x1xf32, #tpu.memory_space<vmem>>, %arg22: memref<8x72xbf16, #tpu.memory_space<vmem>>, %arg23: memref<8x1xf32, #tpu.memory_space<vmem>>, %arg24: memref<8x72xbf16, #tpu.memory_space<vmem>>, %arg25: memref<8x1xf32, #tpu.memory_space<vmem>>, %arg26: memref<8x72xbf16, #tpu.memory_space<vmem>>, %arg27: memref<1x8x128xf32, #tpu.memory_space<vmem>>) attributes {dimension_semantics = [#tpu.dimension_semantics<parallel>], iteration_bounds = array<i64: 2>, scalar_prefetch = 0 : i64, scratch_operands = 0 : i64, tpu.core_type = #tpu.core_type<tc>, window_params = [{transform_indices = @transform_0, window_bounds = array<i64: 1, 8, 256>}, {pipeline_mode = #tpu.pipeline_mode<synchronous>, transform_indices = @transform_1, window_bounds = array<i64: 9, 128>}, {pipeline_mode = #tpu.pipeline_mode<synchronous>, transform_indices = @transform_2, window_bounds = array<i64: 9, 256>}, {pipeline_mode = #tpu.pipeline_mode<synchronous>, transform_indices = @transform_3, window_bounds = array<i64: 256, 128>}, {pipeline_mode = #tpu.pipeline_mode<synchronous>, transform_indices = @transform_4, window_bounds = array<i64: 8, 1>}, {pipeline_mode = #tpu.pipeline_mode<synchronous>, transform_indices = @transform_5, window_bounds = array<i64: 8, 16>}, {pipeline_mode = #tpu.pipeline_mode<synchronous>, transform_indices = @transform_6, window_bounds = array<i64: 8, 1>}, {pipeline_mode = #tpu.pipeline_mode<synchronous>, transform_indices = @transform_7, window_bounds = array<i64: 8, 72>}, {pipeline_mode = #tpu.pipeline_mode<synchronous>, transform_indices = @transform_8, window_bounds = array<i64: 8, 1>}, {pipeline_mode = #tpu.pipeline_mode<synchronous>, transform_indices = @transform_9, window_bounds = array<i64: 8, 72>}, {pipeline_mode = #tpu.pipeline_mode<synchronous>, transform_indices = @transform_10, window_bounds = array<i64: 8, 1>}, {pipeline_mode = #tpu.pipeline_mode<synchronous>, transform_indices = @transform_11, window_bounds = array<i64: 8, 8>}, {pipeline_mode = #tpu.pipeline_mode<synchronous>, transform_indices = @transform_12, window_bounds = array<i64: 8, 1>}, {pipeline_mode = #tpu.pipeline_mode<synchronous>, transform_indices = @transform_13, window_bounds = array<i64: 8, 72>}, {pipeline_mode = #tpu.pipeline_mode<synchronous>, transform_indices = @transform_14, window_bounds = array<i64: 8, 1>}, {pipeline_mode = #tpu.pipeline_mode<synchronous>, transform_indices = @transform_15, window_bounds = array<i64: 8, 72>}, {pipeline_mode = #tpu.pipeline_mode<synchronous>, transform_indices = @transform_16, window_bounds = array<i64: 8, 1>}, {pipeline_mode = #tpu.pipeline_mode<synchronous>, transform_indices = @transform_17, window_bounds = array<i64: 8, 32>}, {pipeline_mode = #tpu.pipeline_mode<synchronous>, transform_indices = @transform_18, window_bounds = array<i64: 8, 1>}, {pipeline_mode = #tpu.pipeline_mode<synchronous>, transform_indices = @transform_19, window_bounds = array<i64: 8, 72>}, {pipeline_mode = #tpu.pipeline_mode<synchronous>, transform_indices = @transform_20, window_bounds = array<i64: 8, 1>}, {pipeline_mode = #tpu.pipeline_mode<synchronous>, transform_indices = @transform_21, window_bounds = array<i64: 8, 72>}, {pipeline_mode = #tpu.pipeline_mode<synchronous>, transform_indices = @transform_22, window_bounds = array<i64: 8, 1>}, {pipeline_mode = #tpu.pipeline_mode<synchronous>, transform_indices = @transform_23, window_bounds = array<i64: 8, 72>}, {pipeline_mode = #tpu.pipeline_mode<synchronous>, transform_indices = @transform_24, window_bounds = array<i64: 8, 1>}, {pipeline_mode = #tpu.pipeline_mode<synchronous>, transform_indices = @transform_25, window_bounds = array<i64: 8, 72>}, {transform_indices = @transform_26, window_bounds = array<i64: 1, 8, 128>}]} {
    %c0 = arith.constant 0 : index
    %c0_0 = arith.constant 0 : index
    %0 = vector.load %arg2[%c0, %c0_0] : memref<9x128xf32, #tpu.memory_space<vmem>>, vector<9x128xf32>
    %c0_1 = arith.constant 0 : index
    %c0_2 = arith.constant 0 : index
    %1 = vector.load %arg3[%c0_1, %c0_2] : memref<9x256xf32, #tpu.memory_space<vmem>>, vector<9x256xf32>
    %c0_3 = arith.constant 0 : index
    %c0_4 = arith.constant 0 : index
    %2 = vector.load %arg4[%c0_3, %c0_4] : memref<256x128xbf16, #tpu.memory_space<vmem>>, vector<256x128xbf16>
    %c0_5 = arith.constant 0 : index
    %c0_6 = arith.constant 0 : index
    %3 = vector.load %arg5[%c0_5, %c0_6] : memref<8x1xf32, #tpu.memory_space<vmem>>, vector<8x1xf32>
    %c0_7 = arith.constant 0 : index
    %c0_8 = arith.constant 0 : index
    %4 = vector.load %arg6[%c0_7, %c0_8] : memref<8x16xbf16, #tpu.memory_space<vmem>>, vector<8x16xbf16>
    %c0_9 = arith.constant 0 : index
    %c0_10 = arith.constant 0 : index
    %5 = vector.load %arg7[%c0_9, %c0_10] : memref<8x1xf32, #tpu.memory_space<vmem>>, vector<8x1xf32>
    %c0_11 = arith.constant 0 : index
    %c0_12 = arith.constant 0 : index
    %6 = vector.load %arg8[%c0_11, %c0_12] : memref<8x72xbf16, #tpu.memory_space<vmem>>, vector<8x72xbf16>
    %c0_13 = arith.constant 0 : index
    %c0_14 = arith.constant 0 : index
    %7 = vector.load %arg9[%c0_13, %c0_14] : memref<8x1xf32, #tpu.memory_space<vmem>>, vector<8x1xf32>
    %c0_15 = arith.constant 0 : index
    %c0_16 = arith.constant 0 : index
    %8 = vector.load %arg10[%c0_15, %c0_16] : memref<8x72xbf16, #tpu.memory_space<vmem>>, vector<8x72xbf16>
    %c0_17 = arith.constant 0 : index
    %c0_18 = arith.constant 0 : index
    %9 = vector.load %arg11[%c0_17, %c0_18] : memref<8x1xf32, #tpu.memory_space<vmem>>, vector<8x1xf32>
    %c0_19 = arith.constant 0 : index
    %c0_20 = arith.constant 0 : index
    %10 = vector.load %arg12[%c0_19, %c0_20] : memref<8x8xbf16, #tpu.memory_space<vmem>>, vector<8x8xbf16>
    %c0_21 = arith.constant 0 : index
    %c0_22 = arith.constant 0 : index
    %11 = vector.load %arg13[%c0_21, %c0_22] : memref<8x1xf32, #tpu.memory_space<vmem>>, vector<8x1xf32>
    %c0_23 = arith.constant 0 : index
    %c0_24 = arith.constant 0 : index
    %12 = vector.load %arg14[%c0_23, %c0_24] : memref<8x72xbf16, #tpu.memory_space<vmem>>, vector<8x72xbf16>
    %c0_25 = arith.constant 0 : index
    %c0_26 = arith.constant 0 : index
    %13 = vector.load %arg15[%c0_25, %c0_26] : memref<8x1xf32, #tpu.memory_space<vmem>>, vector<8x1xf32>
    %c0_27 = arith.constant 0 : index
    %c0_28 = arith.constant 0 : index
    %14 = vector.load %arg16[%c0_27, %c0_28] : memref<8x72xbf16, #tpu.memory_space<vmem>>, vector<8x72xbf16>
    %c0_29 = arith.constant 0 : index
    %c0_30 = arith.constant 0 : index
    %15 = vector.load %arg17[%c0_29, %c0_30] : memref<8x1xf32, #tpu.memory_space<vmem>>, vector<8x1xf32>
    %c0_31 = arith.constant 0 : index
    %c0_32 = arith.constant 0 : index
    %16 = vector.load %arg18[%c0_31, %c0_32] : memref<8x32xbf16, #tpu.memory_space<vmem>>, vector<8x32xbf16>
    %c0_33 = arith.constant 0 : index
    %c0_34 = arith.constant 0 : index
    %17 = vector.load %arg19[%c0_33, %c0_34] : memref<8x1xf32, #tpu.memory_space<vmem>>, vector<8x1xf32>
    %c0_35 = arith.constant 0 : index
    %c0_36 = arith.constant 0 : index
    %18 = vector.load %arg20[%c0_35, %c0_36] : memref<8x72xbf16, #tpu.memory_space<vmem>>, vector<8x72xbf16>
    %c0_37 = arith.constant 0 : index
    %c0_38 = arith.constant 0 : index
    %19 = vector.load %arg21[%c0_37, %c0_38] : memref<8x1xf32, #tpu.memory_space<vmem>>, vector<8x1xf32>
    %c0_39 = arith.constant 0 : index
    %c0_40 = arith.constant 0 : index
    %20 = vector.load %arg22[%c0_39, %c0_40] : memref<8x72xbf16, #tpu.memory_space<vmem>>, vector<8x72xbf16>
    %c0_41 = arith.constant 0 : index
    %c0_42 = arith.constant 0 : index
    %21 = vector.load %arg23[%c0_41, %c0_42] : memref<8x1xf32, #tpu.memory_space<vmem>>, vector<8x1xf32>
    %c0_43 = arith.constant 0 : index
    %c0_44 = arith.constant 0 : index
    %22 = vector.load %arg24[%c0_43, %c0_44] : memref<8x72xbf16, #tpu.memory_space<vmem>>, vector<8x72xbf16>
    %c0_45 = arith.constant 0 : index
    %c0_46 = arith.constant 0 : index
    %23 = vector.load %arg25[%c0_45, %c0_46] : memref<8x1xf32, #tpu.memory_space<vmem>>, vector<8x1xf32>
    %c0_47 = arith.constant 0 : index
    %c0_48 = arith.constant 0 : index
    %24 = vector.load %arg26[%c0_47, %c0_48] : memref<8x72xbf16, #tpu.memory_space<vmem>>, vector<8x72xbf16>
    %c0_49 = arith.constant 0 : index
    %c0_50 = arith.constant 0 : index
    %c0_51 = arith.constant 0 : index
    %25 = vector.load %arg1[%c0_49, %c0_50, %c0_51] : memref<1x8x256xf32, #tpu.memory_space<vmem>>, vector<1x8x256xf32>
    %26 = vector.shape_cast %25 : vector<1x8x256xf32> to vector<8x256xf32>
    %c17_i32 = arith.constant 17 : i32
    %27 = tpu.dynamic_rotate %26 by %c17_i32 dim 1 : vector<8x256xf32>, i32 -> vector<8x256xf32>
    %28 = vector.extract_strided_slice %1 {offsets = [0, 0], sizes = [1, 256], strides = [1, 1]} : vector<9x256xf32> to vector<1x256xf32>
    %29 = vector.broadcast %28 : vector<1x256xf32> to vector<8x256xf32>
    %30 = arith.mulf %27, %29 : vector<8x256xf32>
    %c16_i32 = arith.constant 16 : i32
    %31 = tpu.dynamic_rotate %26 by %c16_i32 dim 1 : vector<8x256xf32>, i32 -> vector<8x256xf32>
    %32 = vector.extract_strided_slice %1 {offsets = [1, 0], sizes = [1, 256], strides = [1, 1]} : vector<9x256xf32> to vector<1x256xf32>
    %33 = vector.broadcast %32 : vector<1x256xf32> to vector<8x256xf32>
    %34 = arith.mulf %31, %33 : vector<8x256xf32>
    %c15_i32 = arith.constant 15 : i32
    %35 = tpu.dynamic_rotate %26 by %c15_i32 dim 1 : vector<8x256xf32>, i32 -> vector<8x256xf32>
    %36 = vector.extract_strided_slice %1 {offsets = [2, 0], sizes = [1, 256], strides = [1, 1]} : vector<9x256xf32> to vector<1x256xf32>
    %37 = vector.broadcast %36 : vector<1x256xf32> to vector<8x256xf32>
    %38 = arith.mulf %35, %37 : vector<8x256xf32>
    %c1_i32 = arith.constant 1 : i32
    %39 = tpu.dynamic_rotate %26 by %c1_i32 dim 1 : vector<8x256xf32>, i32 -> vector<8x256xf32>
    %40 = vector.extract_strided_slice %1 {offsets = [3, 0], sizes = [1, 256], strides = [1, 1]} : vector<9x256xf32> to vector<1x256xf32>
    %41 = vector.broadcast %40 : vector<1x256xf32> to vector<8x256xf32>
    %42 = arith.mulf %39, %41 : vector<8x256xf32>
    %c255_i32 = arith.constant 255 : i32
    %43 = tpu.dynamic_rotate %26 by %c255_i32 dim 1 : vector<8x256xf32>, i32 -> vector<8x256xf32>
    %44 = vector.extract_strided_slice %1 {offsets = [5, 0], sizes = [1, 256], strides = [1, 1]} : vector<9x256xf32> to vector<1x256xf32>
    %45 = vector.broadcast %44 : vector<1x256xf32> to vector<8x256xf32>
    %46 = arith.mulf %43, %45 : vector<8x256xf32>
    %c241_i32 = arith.constant 241 : i32
    %47 = tpu.dynamic_rotate %26 by %c241_i32 dim 1 : vector<8x256xf32>, i32 -> vector<8x256xf32>
    %48 = vector.extract_strided_slice %1 {offsets = [6, 0], sizes = [1, 256], strides = [1, 1]} : vector<9x256xf32> to vector<1x256xf32>
    %49 = vector.broadcast %48 : vector<1x256xf32> to vector<8x256xf32>
    %50 = arith.mulf %47, %49 : vector<8x256xf32>
    %c240_i32 = arith.constant 240 : i32
    %51 = tpu.dynamic_rotate %26 by %c240_i32 dim 1 : vector<8x256xf32>, i32 -> vector<8x256xf32>
    %52 = vector.extract_strided_slice %1 {offsets = [7, 0], sizes = [1, 256], strides = [1, 1]} : vector<9x256xf32> to vector<1x256xf32>
    %53 = vector.broadcast %52 : vector<1x256xf32> to vector<8x256xf32>
    %54 = arith.mulf %51, %53 : vector<8x256xf32>
    %c239_i32 = arith.constant 239 : i32
    %55 = tpu.dynamic_rotate %26 by %c239_i32 dim 1 : vector<8x256xf32>, i32 -> vector<8x256xf32>
    %56 = vector.extract_strided_slice %1 {offsets = [8, 0], sizes = [1, 256], strides = [1, 1]} : vector<9x256xf32> to vector<1x256xf32>
    %57 = vector.broadcast %56 : vector<1x256xf32> to vector<8x256xf32>
    %58 = arith.mulf %55, %57 : vector<8x256xf32>
    %59 = tpu.concatenate %30, %34, %38, %42, %26, %46, %50, %54, %58 in 0 : vector<8x256xf32>, vector<8x256xf32>, vector<8x256xf32>, vector<8x256xf32>, vector<8x256xf32>, vector<8x256xf32>, vector<8x256xf32>, vector<8x256xf32>, vector<8x256xf32> -> vector<72x256xf32>
    %60 = arith.truncf %59 : vector<72x256xf32> to vector<72x256xbf16>
    %cst = arith.constant dense<0.000000e+00> : vector<8x256xf32>
    %61 = tpu.matmul %6, %60, %cst {dimension_numbers = #tpu.dot_dimension_numbers<[1], [0], [0], [1], [0, 0, 1, 1], [], []>} : vector<8x72xbf16>, vector<72x256xbf16>, vector<8x256xf32> -> vector<8x256xf32>
    %62 = arith.truncf %61 : vector<8x256xf32> to vector<8x256xbf16>
    %cst_52 = arith.constant dense<0.000000e+00> : vector<8x128xf32>
    %63 = tpu.matmul %62, %2, %cst_52 {dimension_numbers = #tpu.dot_dimension_numbers<[1], [0], [0], [1], [0, 0, 1, 1], [], []>} : vector<8x256xbf16>, vector<256x128xbf16>, vector<8x128xf32> -> vector<8x128xf32>
    %64 = vector.broadcast %5 : vector<8x1xf32> to vector<8x128xf32>
    %65 = arith.addf %63, %64 : vector<8x128xf32>
    %cst_53 = arith.constant 0.000000e+00 : f32
    %66 = vector.broadcast %cst_53 : f32 to vector<8x128xf32>
    %67 = arith.maximumf %65, %66 : vector<8x128xf32>
    %c9_i32 = arith.constant 9 : i32
    %68 = tpu.dynamic_rotate %67 by %c9_i32 dim 1 : vector<8x128xf32>, i32 -> vector<8x128xf32>
    %69 = vector.extract_strided_slice %0 {offsets = [0, 0], sizes = [1, 128], strides = [1, 1]} : vector<9x128xf32> to vector<1x128xf32>
    %70 = vector.broadcast %69 : vector<1x128xf32> to vector<8x128xf32>
    %71 = arith.mulf %68, %70 : vector<8x128xf32>
    %c8_i32 = arith.constant 8 : i32
    %72 = tpu.dynamic_rotate %67 by %c8_i32 dim 1 : vector<8x128xf32>, i32 -> vector<8x128xf32>
    %73 = vector.extract_strided_slice %0 {offsets = [1, 0], sizes = [1, 128], strides = [1, 1]} : vector<9x128xf32> to vector<1x128xf32>
    %74 = vector.broadcast %73 : vector<1x128xf32> to vector<8x128xf32>
    %75 = arith.mulf %72, %74 : vector<8x128xf32>
    %c7_i32 = arith.constant 7 : i32
    %76 = tpu.dynamic_rotate %67 by %c7_i32 dim 1 : vector<8x128xf32>, i32 -> vector<8x128xf32>
    %77 = vector.extract_strided_slice %0 {offsets = [2, 0], sizes = [1, 128], strides = [1, 1]} : vector<9x128xf32> to vector<1x128xf32>
    %78 = vector.broadcast %77 : vector<1x128xf32> to vector<8x128xf32>
    %79 = arith.mulf %76, %78 : vector<8x128xf32>
    %c1_i32_54 = arith.constant 1 : i32
    %80 = tpu.dynamic_rotate %67 by %c1_i32_54 dim 1 : vector<8x128xf32>, i32 -> vector<8x128xf32>
    %81 = vector.extract_strided_slice %0 {offsets = [3, 0], sizes = [1, 128], strides = [1, 1]} : vector<9x128xf32> to vector<1x128xf32>
    %82 = vector.broadcast %81 : vector<1x128xf32> to vector<8x128xf32>
    %83 = arith.mulf %80, %82 : vector<8x128xf32>
    %c127_i32 = arith.constant 127 : i32
    %84 = tpu.dynamic_rotate %67 by %c127_i32 dim 1 : vector<8x128xf32>, i32 -> vector<8x128xf32>
    %85 = vector.extract_strided_slice %0 {offsets = [5, 0], sizes = [1, 128], strides = [1, 1]} : vector<9x128xf32> to vector<1x128xf32>
    %86 = vector.broadcast %85 : vector<1x128xf32> to vector<8x128xf32>
    %87 = arith.mulf %84, %86 : vector<8x128xf32>
    %c121_i32 = arith.constant 121 : i32
    %88 = tpu.dynamic_rotate %67 by %c121_i32 dim 1 : vector<8x128xf32>, i32 -> vector<8x128xf32>
    %89 = vector.extract_strided_slice %0 {offsets = [6, 0], sizes = [1, 128], strides = [1, 1]} : vector<9x128xf32> to vector<1x128xf32>
    %90 = vector.broadcast %89 : vector<1x128xf32> to vector<8x128xf32>
    %91 = arith.mulf %88, %90 : vector<8x128xf32>
    %c120_i32 = arith.constant 120 : i32
    %92 = tpu.dynamic_rotate %67 by %c120_i32 dim 1 : vector<8x128xf32>, i32 -> vector<8x128xf32>
    %93 = vector.extract_strided_slice %0 {offsets = [7, 0], sizes = [1, 128], strides = [1, 1]} : vector<9x128xf32> to vector<1x128xf32>
    %94 = vector.broadcast %93 : vector<1x128xf32> to vector<8x128xf32>
    %95 = arith.mulf %92, %94 : vector<8x128xf32>
    %c119_i32 = arith.constant 119 : i32
    %96 = tpu.dynamic_rotate %67 by %c119_i32 dim 1 : vector<8x128xf32>, i32 -> vector<8x128xf32>
    %97 = vector.extract_strided_slice %0 {offsets = [8, 0], sizes = [1, 128], strides = [1, 1]} : vector<9x128xf32> to vector<1x128xf32>
    %98 = vector.broadcast %97 : vector<1x128xf32> to vector<8x128xf32>
    %99 = arith.mulf %96, %98 : vector<8x128xf32>
    %100 = tpu.concatenate %71, %75, %79, %83, %67, %87, %91, %95, %99 in 0 : vector<8x128xf32>, vector<8x128xf32>, vector<8x128xf32>, vector<8x128xf32>, vector<8x128xf32>, vector<8x128xf32>, vector<8x128xf32>, vector<8x128xf32>, vector<8x128xf32> -> vector<72x128xf32>
    %101 = arith.truncf %100 : vector<72x128xf32> to vector<72x128xbf16>
    %cst_55 = arith.constant dense<0.000000e+00> : vector<8x128xf32>
    %102 = tpu.matmul %8, %101, %cst_55 {dimension_numbers = #tpu.dot_dimension_numbers<[1], [0], [0], [1], [0, 0, 1, 1], [], []>} : vector<8x72xbf16>, vector<72x128xbf16>, vector<8x128xf32> -> vector<8x128xf32>
    %103 = vector.broadcast %7 : vector<8x1xf32> to vector<8x128xf32>
    %104 = arith.addf %102, %103 : vector<8x128xf32>
    %c255_i32_56 = arith.constant 255 : i32
    %105 = tpu.dynamic_rotate %26 by %c255_i32_56 dim 1 : vector<8x256xf32>, i32 -> vector<8x256xf32>
    %106 = arith.maximumf %26, %105 : vector<8x256xf32>
    %c240_i32_57 = arith.constant 240 : i32
    %107 = tpu.dynamic_rotate %26 by %c240_i32_57 dim 1 : vector<8x256xf32>, i32 -> vector<8x256xf32>
    %108 = arith.maximumf %106, %107 : vector<8x256xf32>
    %c239_i32_58 = arith.constant 239 : i32
    %109 = tpu.dynamic_rotate %26 by %c239_i32_58 dim 1 : vector<8x256xf32>, i32 -> vector<8x256xf32>
    %110 = arith.maximumf %108, %109 : vector<8x256xf32>
    %111 = arith.truncf %110 : vector<8x256xf32> to vector<8x256xbf16>
    %cst_59 = arith.constant dense<0.000000e+00> : vector<8x128xf32>
    %112 = tpu.matmul %111, %2, %cst_59 {dimension_numbers = #tpu.dot_dimension_numbers<[1], [0], [0], [1], [0, 0, 1, 1], [], []>} : vector<8x256xbf16>, vector<256x128xbf16>, vector<8x128xf32> -> vector<8x128xf32>
    %113 = arith.truncf %112 : vector<8x128xf32> to vector<8x128xbf16>
    %cst_60 = arith.constant dense<0.000000e+00> : vector<8x128xf32>
    %114 = tpu.matmul %10, %113, %cst_60 {dimension_numbers = #tpu.dot_dimension_numbers<[1], [0], [0], [1], [0, 0, 1, 1], [], []>} : vector<8x8xbf16>, vector<8x128xbf16>, vector<8x128xf32> -> vector<8x128xf32>
    %115 = vector.broadcast %9 : vector<8x1xf32> to vector<8x128xf32>
    %116 = arith.addf %114, %115 : vector<8x128xf32>
    %117 = arith.addf %104, %116 : vector<8x128xf32>
    %cst_61 = arith.constant 0.000000e+00 : f32
    %118 = vector.broadcast %cst_61 : f32 to vector<8x128xf32>
    %119 = arith.maximumf %117, %118 : vector<8x128xf32>
    %c9_i32_62 = arith.constant 9 : i32
    %120 = tpu.dynamic_rotate %119 by %c9_i32_62 dim 1 : vector<8x128xf32>, i32 -> vector<8x128xf32>
    %121 = vector.extract_strided_slice %0 {offsets = [0, 0], sizes = [1, 128], strides = [1, 1]} : vector<9x128xf32> to vector<1x128xf32>
    %122 = vector.broadcast %121 : vector<1x128xf32> to vector<8x128xf32>
    %123 = arith.mulf %120, %122 : vector<8x128xf32>
    %c8_i32_63 = arith.constant 8 : i32
    %124 = tpu.dynamic_rotate %119 by %c8_i32_63 dim 1 : vector<8x128xf32>, i32 -> vector<8x128xf32>
    %125 = vector.extract_strided_slice %0 {offsets = [1, 0], sizes = [1, 128], strides = [1, 1]} : vector<9x128xf32> to vector<1x128xf32>
    %126 = vector.broadcast %125 : vector<1x128xf32> to vector<8x128xf32>
    %127 = arith.mulf %124, %126 : vector<8x128xf32>
    %c7_i32_64 = arith.constant 7 : i32
    %128 = tpu.dynamic_rotate %119 by %c7_i32_64 dim 1 : vector<8x128xf32>, i32 -> vector<8x128xf32>
    %129 = vector.extract_strided_slice %0 {offsets = [2, 0], sizes = [1, 128], strides = [1, 1]} : vector<9x128xf32> to vector<1x128xf32>
    %130 = vector.broadcast %129 : vector<1x128xf32> to vector<8x128xf32>
    %131 = arith.mulf %128, %130 : vector<8x128xf32>
    %c1_i32_65 = arith.constant 1 : i32
    %132 = tpu.dynamic_rotate %119 by %c1_i32_65 dim 1 : vector<8x128xf32>, i32 -> vector<8x128xf32>
    %133 = vector.extract_strided_slice %0 {offsets = [3, 0], sizes = [1, 128], strides = [1, 1]} : vector<9x128xf32> to vector<1x128xf32>
    %134 = vector.broadcast %133 : vector<1x128xf32> to vector<8x128xf32>
    %135 = arith.mulf %132, %134 : vector<8x128xf32>
    %c127_i32_66 = arith.constant 127 : i32
    %136 = tpu.dynamic_rotate %119 by %c127_i32_66 dim 1 : vector<8x128xf32>, i32 -> vector<8x128xf32>
    %137 = vector.extract_strided_slice %0 {offsets = [5, 0], sizes = [1, 128], strides = [1, 1]} : vector<9x128xf32> to vector<1x128xf32>
    %138 = vector.broadcast %137 : vector<1x128xf32> to vector<8x128xf32>
    %139 = arith.mulf %136, %138 : vector<8x128xf32>
    %c121_i32_67 = arith.constant 121 : i32
    %140 = tpu.dynamic_rotate %119 by %c121_i32_67 dim 1 : vector<8x128xf32>, i32 -> vector<8x128xf32>
    %141 = vector.extract_strided_slice %0 {offsets = [6, 0], sizes = [1, 128], strides = [1, 1]} : vector<9x128xf32> to vector<1x128xf32>
    %142 = vector.broadcast %141 : vector<1x128xf32> to vector<8x128xf32>
    %143 = arith.mulf %140, %142 : vector<8x128xf32>
    %c120_i32_68 = arith.constant 120 : i32
    %144 = tpu.dynamic_rotate %119 by %c120_i32_68 dim 1 : vector<8x128xf32>, i32 -> vector<8x128xf32>
    %145 = vector.extract_strided_slice %0 {offsets = [7, 0], sizes = [1, 128], strides = [1, 1]} : vector<9x128xf32> to vector<1x128xf32>
    %146 = vector.broadcast %145 : vector<1x128xf32> to vector<8x128xf32>
    %147 = arith.mulf %144, %146 : vector<8x128xf32>
    %c119_i32_69 = arith.constant 119 : i32
    %148 = tpu.dynamic_rotate %119 by %c119_i32_69 dim 1 : vector<8x128xf32>, i32 -> vector<8x128xf32>
    %149 = vector.extract_strided_slice %0 {offsets = [8, 0], sizes = [1, 128], strides = [1, 1]} : vector<9x128xf32> to vector<1x128xf32>
    %150 = vector.broadcast %149 : vector<1x128xf32> to vector<8x128xf32>
    %151 = arith.mulf %148, %150 : vector<8x128xf32>
    %152 = tpu.concatenate %123, %127, %131, %135, %119, %139, %143, %147, %151 in 0 : vector<8x128xf32>, vector<8x128xf32>, vector<8x128xf32>, vector<8x128xf32>, vector<8x128xf32>, vector<8x128xf32>, vector<8x128xf32>, vector<8x128xf32>, vector<8x128xf32> -> vector<72x128xf32>
    %153 = arith.truncf %152 : vector<72x128xf32> to vector<72x128xbf16>
    %cst_70 = arith.constant dense<0.000000e+00> : vector<8x128xf32>
    %154 = tpu.matmul %12, %153, %cst_70 {dimension_numbers = #tpu.dot_dimension_numbers<[1], [0], [0], [1], [0, 0, 1, 1], [], []>} : vector<8x72xbf16>, vector<72x128xbf16>, vector<8x128xf32> -> vector<8x128xf32>
    %155 = vector.broadcast %11 : vector<8x1xf32> to vector<8x128xf32>
    %156 = arith.addf %154, %155 : vector<8x128xf32>
    %cst_71 = arith.constant 0.000000e+00 : f32
    %157 = vector.broadcast %cst_71 : f32 to vector<8x128xf32>
    %158 = arith.maximumf %156, %157 : vector<8x128xf32>
    %c9_i32_72 = arith.constant 9 : i32
    %159 = tpu.dynamic_rotate %158 by %c9_i32_72 dim 1 : vector<8x128xf32>, i32 -> vector<8x128xf32>
    %160 = vector.extract_strided_slice %0 {offsets = [0, 0], sizes = [1, 128], strides = [1, 1]} : vector<9x128xf32> to vector<1x128xf32>
    %161 = vector.broadcast %160 : vector<1x128xf32> to vector<8x128xf32>
    %162 = arith.mulf %159, %161 : vector<8x128xf32>
    %c8_i32_73 = arith.constant 8 : i32
    %163 = tpu.dynamic_rotate %158 by %c8_i32_73 dim 1 : vector<8x128xf32>, i32 -> vector<8x128xf32>
    %164 = vector.extract_strided_slice %0 {offsets = [1, 0], sizes = [1, 128], strides = [1, 1]} : vector<9x128xf32> to vector<1x128xf32>
    %165 = vector.broadcast %164 : vector<1x128xf32> to vector<8x128xf32>
    %166 = arith.mulf %163, %165 : vector<8x128xf32>
    %c7_i32_74 = arith.constant 7 : i32
    %167 = tpu.dynamic_rotate %158 by %c7_i32_74 dim 1 : vector<8x128xf32>, i32 -> vector<8x128xf32>
    %168 = vector.extract_strided_slice %0 {offsets = [2, 0], sizes = [1, 128], strides = [1, 1]} : vector<9x128xf32> to vector<1x128xf32>
    %169 = vector.broadcast %168 : vector<1x128xf32> to vector<8x128xf32>
    %170 = arith.mulf %167, %169 : vector<8x128xf32>
    %c1_i32_75 = arith.constant 1 : i32
    %171 = tpu.dynamic_rotate %158 by %c1_i32_75 dim 1 : vector<8x128xf32>, i32 -> vector<8x128xf32>
    %172 = vector.extract_strided_slice %0 {offsets = [3, 0], sizes = [1, 128], strides = [1, 1]} : vector<9x128xf32> to vector<1x128xf32>
    %173 = vector.broadcast %172 : vector<1x128xf32> to vector<8x128xf32>
    %174 = arith.mulf %171, %173 : vector<8x128xf32>
    %c127_i32_76 = arith.constant 127 : i32
    %175 = tpu.dynamic_rotate %158 by %c127_i32_76 dim 1 : vector<8x128xf32>, i32 -> vector<8x128xf32>
    %176 = vector.extract_strided_slice %0 {offsets = [5, 0], sizes = [1, 128], strides = [1, 1]} : vector<9x128xf32> to vector<1x128xf32>
    %177 = vector.broadcast %176 : vector<1x128xf32> to vector<8x128xf32>
    %178 = arith.mulf %175, %177 : vector<8x128xf32>
    %c121_i32_77 = arith.constant 121 : i32
    %179 = tpu.dynamic_rotate %158 by %c121_i32_77 dim 1 : vector<8x128xf32>, i32 -> vector<8x128xf32>
    %180 = vector.extract_strided_slice %0 {offsets = [6, 0], sizes = [1, 128], strides = [1, 1]} : vector<9x128xf32> to vector<1x128xf32>
    %181 = vector.broadcast %180 : vector<1x128xf32> to vector<8x128xf32>
    %182 = arith.mulf %179, %181 : vector<8x128xf32>
    %c120_i32_78 = arith.constant 120 : i32
    %183 = tpu.dynamic_rotate %158 by %c120_i32_78 dim 1 : vector<8x128xf32>, i32 -> vector<8x128xf32>
    %184 = vector.extract_strided_slice %0 {offsets = [7, 0], sizes = [1, 128], strides = [1, 1]} : vector<9x128xf32> to vector<1x128xf32>
    %185 = vector.broadcast %184 : vector<1x128xf32> to vector<8x128xf32>
    %186 = arith.mulf %183, %185 : vector<8x128xf32>
    %c119_i32_79 = arith.constant 119 : i32
    %187 = tpu.dynamic_rotate %158 by %c119_i32_79 dim 1 : vector<8x128xf32>, i32 -> vector<8x128xf32>
    %188 = vector.extract_strided_slice %0 {offsets = [8, 0], sizes = [1, 128], strides = [1, 1]} : vector<9x128xf32> to vector<1x128xf32>
    %189 = vector.broadcast %188 : vector<1x128xf32> to vector<8x128xf32>
    %190 = arith.mulf %187, %189 : vector<8x128xf32>
    %191 = tpu.concatenate %162, %166, %170, %174, %158, %178, %182, %186, %190 in 0 : vector<8x128xf32>, vector<8x128xf32>, vector<8x128xf32>, vector<8x128xf32>, vector<8x128xf32>, vector<8x128xf32>, vector<8x128xf32>, vector<8x128xf32>, vector<8x128xf32> -> vector<72x128xf32>
    %192 = arith.truncf %191 : vector<72x128xf32> to vector<72x128xbf16>
    %cst_80 = arith.constant dense<0.000000e+00> : vector<8x128xf32>
    %193 = tpu.matmul %14, %192, %cst_80 {dimension_numbers = #tpu.dot_dimension_numbers<[1], [0], [0], [1], [0, 0, 1, 1], [], []>} : vector<8x72xbf16>, vector<72x128xbf16>, vector<8x128xf32> -> vector<8x128xf32>
    %194 = vector.broadcast %13 : vector<8x1xf32> to vector<8x128xf32>
    %195 = arith.addf %193, %194 : vector<8x128xf32>
    %196 = arith.addf %195, %119 : vector<8x128xf32>
    %cst_81 = arith.constant 0.000000e+00 : f32
    %197 = vector.broadcast %cst_81 : f32 to vector<8x128xf32>
    %198 = arith.maximumf %196, %197 : vector<8x128xf32>
    %199 = tpu.concatenate %198, %119 in 0 : vector<8x128xf32>, vector<8x128xf32> -> vector<16x128xf32>
    %200 = arith.truncf %199 : vector<16x128xf32> to vector<16x128xbf16>
    %cst_82 = arith.constant dense<0.000000e+00> : vector<8x128xf32>
    %201 = tpu.matmul %4, %200, %cst_82 {dimension_numbers = #tpu.dot_dimension_numbers<[1], [0], [0], [1], [0, 0, 1, 1], [], []>} : vector<8x16xbf16>, vector<16x128xbf16>, vector<8x128xf32> -> vector<8x128xf32>
    %202 = vector.broadcast %3 : vector<8x1xf32> to vector<8x128xf32>
    %203 = arith.addf %201, %202 : vector<8x128xf32>
    %204 = arith.addf %203, %198 : vector<8x128xf32>
    %cst_83 = arith.constant 0.000000e+00 : f32
    %205 = vector.broadcast %cst_83 : f32 to vector<8x128xf32>
    %206 = arith.maximumf %204, %205 : vector<8x128xf32>
    %c9_i32_84 = arith.constant 9 : i32
    %207 = tpu.dynamic_rotate %206 by %c9_i32_84 dim 1 : vector<8x128xf32>, i32 -> vector<8x128xf32>
    %208 = vector.extract_strided_slice %0 {offsets = [0, 0], sizes = [1, 128], strides = [1, 1]} : vector<9x128xf32> to vector<1x128xf32>
    %209 = vector.broadcast %208 : vector<1x128xf32> to vector<8x128xf32>
    %210 = arith.mulf %207, %209 : vector<8x128xf32>
    %c8_i32_85 = arith.constant 8 : i32
    %211 = tpu.dynamic_rotate %206 by %c8_i32_85 dim 1 : vector<8x128xf32>, i32 -> vector<8x128xf32>
    %212 = vector.extract_strided_slice %0 {offsets = [1, 0], sizes = [1, 128], strides = [1, 1]} : vector<9x128xf32> to vector<1x128xf32>
    %213 = vector.broadcast %212 : vector<1x128xf32> to vector<8x128xf32>
    %214 = arith.mulf %211, %213 : vector<8x128xf32>
    %c7_i32_86 = arith.constant 7 : i32
    %215 = tpu.dynamic_rotate %206 by %c7_i32_86 dim 1 : vector<8x128xf32>, i32 -> vector<8x128xf32>
    %216 = vector.extract_strided_slice %0 {offsets = [2, 0], sizes = [1, 128], strides = [1, 1]} : vector<9x128xf32> to vector<1x128xf32>
    %217 = vector.broadcast %216 : vector<1x128xf32> to vector<8x128xf32>
    %218 = arith.mulf %215, %217 : vector<8x128xf32>
    %c1_i32_87 = arith.constant 1 : i32
    %219 = tpu.dynamic_rotate %206 by %c1_i32_87 dim 1 : vector<8x128xf32>, i32 -> vector<8x128xf32>
    %220 = vector.extract_strided_slice %0 {offsets = [3, 0], sizes = [1, 128], strides = [1, 1]} : vector<9x128xf32> to vector<1x128xf32>
    %221 = vector.broadcast %220 : vector<1x128xf32> to vector<8x128xf32>
    %222 = arith.mulf %219, %221 : vector<8x128xf32>
    %c127_i32_88 = arith.constant 127 : i32
    %223 = tpu.dynamic_rotate %206 by %c127_i32_88 dim 1 : vector<8x128xf32>, i32 -> vector<8x128xf32>
    %224 = vector.extract_strided_slice %0 {offsets = [5, 0], sizes = [1, 128], strides = [1, 1]} : vector<9x128xf32> to vector<1x128xf32>
    %225 = vector.broadcast %224 : vector<1x128xf32> to vector<8x128xf32>
    %226 = arith.mulf %223, %225 : vector<8x128xf32>
    %c121_i32_89 = arith.constant 121 : i32
    %227 = tpu.dynamic_rotate %206 by %c121_i32_89 dim 1 : vector<8x128xf32>, i32 -> vector<8x128xf32>
    %228 = vector.extract_strided_slice %0 {offsets = [6, 0], sizes = [1, 128], strides = [1, 1]} : vector<9x128xf32> to vector<1x128xf32>
    %229 = vector.broadcast %228 : vector<1x128xf32> to vector<8x128xf32>
    %230 = arith.mulf %227, %229 : vector<8x128xf32>
    %c120_i32_90 = arith.constant 120 : i32
    %231 = tpu.dynamic_rotate %206 by %c120_i32_90 dim 1 : vector<8x128xf32>, i32 -> vector<8x128xf32>
    %232 = vector.extract_strided_slice %0 {offsets = [7, 0], sizes = [1, 128], strides = [1, 1]} : vector<9x128xf32> to vector<1x128xf32>
    %233 = vector.broadcast %232 : vector<1x128xf32> to vector<8x128xf32>
    %234 = arith.mulf %231, %233 : vector<8x128xf32>
    %c119_i32_91 = arith.constant 119 : i32
    %235 = tpu.dynamic_rotate %206 by %c119_i32_91 dim 1 : vector<8x128xf32>, i32 -> vector<8x128xf32>
    %236 = vector.extract_strided_slice %0 {offsets = [8, 0], sizes = [1, 128], strides = [1, 1]} : vector<9x128xf32> to vector<1x128xf32>
    %237 = vector.broadcast %236 : vector<1x128xf32> to vector<8x128xf32>
    %238 = arith.mulf %235, %237 : vector<8x128xf32>
    %239 = tpu.concatenate %210, %214, %218, %222, %206, %226, %230, %234, %238 in 0 : vector<8x128xf32>, vector<8x128xf32>, vector<8x128xf32>, vector<8x128xf32>, vector<8x128xf32>, vector<8x128xf32>, vector<8x128xf32>, vector<8x128xf32>, vector<8x128xf32> -> vector<72x128xf32>
    %240 = arith.truncf %239 : vector<72x128xf32> to vector<72x128xbf16>
    %cst_92 = arith.constant dense<0.000000e+00> : vector<8x128xf32>
    %241 = tpu.matmul %18, %240, %cst_92 {dimension_numbers = #tpu.dot_dimension_numbers<[1], [0], [0], [1], [0, 0, 1, 1], [], []>} : vector<8x72xbf16>, vector<72x128xbf16>, vector<8x128xf32> -> vector<8x128xf32>
    %242 = vector.broadcast %17 : vector<8x1xf32> to vector<8x128xf32>
    %243 = arith.addf %241, %242 : vector<8x128xf32>
    %cst_93 = arith.constant 0.000000e+00 : f32
    %244 = vector.broadcast %cst_93 : f32 to vector<8x128xf32>
    %245 = arith.maximumf %243, %244 : vector<8x128xf32>
    %c9_i32_94 = arith.constant 9 : i32
    %246 = tpu.dynamic_rotate %245 by %c9_i32_94 dim 1 : vector<8x128xf32>, i32 -> vector<8x128xf32>
    %247 = vector.extract_strided_slice %0 {offsets = [0, 0], sizes = [1, 128], strides = [1, 1]} : vector<9x128xf32> to vector<1x128xf32>
    %248 = vector.broadcast %247 : vector<1x128xf32> to vector<8x128xf32>
    %249 = arith.mulf %246, %248 : vector<8x128xf32>
    %c8_i32_95 = arith.constant 8 : i32
    %250 = tpu.dynamic_rotate %245 by %c8_i32_95 dim 1 : vector<8x128xf32>, i32 -> vector<8x128xf32>
    %251 = vector.extract_strided_slice %0 {offsets = [1, 0], sizes = [1, 128], strides = [1, 1]} : vector<9x128xf32> to vector<1x128xf32>
    %252 = vector.broadcast %251 : vector<1x128xf32> to vector<8x128xf32>
    %253 = arith.mulf %250, %252 : vector<8x128xf32>
    %c7_i32_96 = arith.constant 7 : i32
    %254 = tpu.dynamic_rotate %245 by %c7_i32_96 dim 1 : vector<8x128xf32>, i32 -> vector<8x128xf32>
    %255 = vector.extract_strided_slice %0 {offsets = [2, 0], sizes = [1, 128], strides = [1, 1]} : vector<9x128xf32> to vector<1x128xf32>
    %256 = vector.broadcast %255 : vector<1x128xf32> to vector<8x128xf32>
    %257 = arith.mulf %254, %256 : vector<8x128xf32>
    %c1_i32_97 = arith.constant 1 : i32
    %258 = tpu.dynamic_rotate %245 by %c1_i32_97 dim 1 : vector<8x128xf32>, i32 -> vector<8x128xf32>
    %259 = vector.extract_strided_slice %0 {offsets = [3, 0], sizes = [1, 128], strides = [1, 1]} : vector<9x128xf32> to vector<1x128xf32>
    %260 = vector.broadcast %259 : vector<1x128xf32> to vector<8x128xf32>
    %261 = arith.mulf %258, %260 : vector<8x128xf32>
    %c127_i32_98 = arith.constant 127 : i32
    %262 = tpu.dynamic_rotate %245 by %c127_i32_98 dim 1 : vector<8x128xf32>, i32 -> vector<8x128xf32>
    %263 = vector.extract_strided_slice %0 {offsets = [5, 0], sizes = [1, 128], strides = [1, 1]} : vector<9x128xf32> to vector<1x128xf32>
    %264 = vector.broadcast %263 : vector<1x128xf32> to vector<8x128xf32>
    %265 = arith.mulf %262, %264 : vector<8x128xf32>
    %c121_i32_99 = arith.constant 121 : i32
    %266 = tpu.dynamic_rotate %245 by %c121_i32_99 dim 1 : vector<8x128xf32>, i32 -> vector<8x128xf32>
    %267 = vector.extract_strided_slice %0 {offsets = [6, 0], sizes = [1, 128], strides = [1, 1]} : vector<9x128xf32> to vector<1x128xf32>
    %268 = vector.broadcast %267 : vector<1x128xf32> to vector<8x128xf32>
    %269 = arith.mulf %266, %268 : vector<8x128xf32>
    %c120_i32_100 = arith.constant 120 : i32
    %270 = tpu.dynamic_rotate %245 by %c120_i32_100 dim 1 : vector<8x128xf32>, i32 -> vector<8x128xf32>
    %271 = vector.extract_strided_slice %0 {offsets = [7, 0], sizes = [1, 128], strides = [1, 1]} : vector<9x128xf32> to vector<1x128xf32>
    %272 = vector.broadcast %271 : vector<1x128xf32> to vector<8x128xf32>
    %273 = arith.mulf %270, %272 : vector<8x128xf32>
    %c119_i32_101 = arith.constant 119 : i32
    %274 = tpu.dynamic_rotate %245 by %c119_i32_101 dim 1 : vector<8x128xf32>, i32 -> vector<8x128xf32>
    %275 = vector.extract_strided_slice %0 {offsets = [8, 0], sizes = [1, 128], strides = [1, 1]} : vector<9x128xf32> to vector<1x128xf32>
    %276 = vector.broadcast %275 : vector<1x128xf32> to vector<8x128xf32>
    %277 = arith.mulf %274, %276 : vector<8x128xf32>
    %278 = tpu.concatenate %249, %253, %257, %261, %245, %265, %269, %273, %277 in 0 : vector<8x128xf32>, vector<8x128xf32>, vector<8x128xf32>, vector<8x128xf32>, vector<8x128xf32>, vector<8x128xf32>, vector<8x128xf32>, vector<8x128xf32>, vector<8x128xf32> -> vector<72x128xf32>
    %279 = arith.truncf %278 : vector<72x128xf32> to vector<72x128xbf16>
    %cst_102 = arith.constant dense<0.000000e+00> : vector<8x128xf32>
    %280 = tpu.matmul %20, %279, %cst_102 {dimension_numbers = #tpu.dot_dimension_numbers<[1], [0], [0], [1], [0, 0, 1, 1], [], []>} : vector<8x72xbf16>, vector<72x128xbf16>, vector<8x128xf32> -> vector<8x128xf32>
    %281 = vector.broadcast %19 : vector<8x1xf32> to vector<8x128xf32>
    %282 = arith.addf %280, %281 : vector<8x128xf32>
    %283 = arith.addf %282, %206 : vector<8x128xf32>
    %cst_103 = arith.constant 0.000000e+00 : f32
    %284 = vector.broadcast %cst_103 : f32 to vector<8x128xf32>
    %285 = arith.maximumf %283, %284 : vector<8x128xf32>
    %c9_i32_104 = arith.constant 9 : i32
    %286 = tpu.dynamic_rotate %285 by %c9_i32_104 dim 1 : vector<8x128xf32>, i32 -> vector<8x128xf32>
    %287 = vector.extract_strided_slice %0 {offsets = [0, 0], sizes = [1, 128], strides = [1, 1]} : vector<9x128xf32> to vector<1x128xf32>
    %288 = vector.broadcast %287 : vector<1x128xf32> to vector<8x128xf32>
    %289 = arith.mulf %286, %288 : vector<8x128xf32>
    %c8_i32_105 = arith.constant 8 : i32
    %290 = tpu.dynamic_rotate %285 by %c8_i32_105 dim 1 : vector<8x128xf32>, i32 -> vector<8x128xf32>
    %291 = vector.extract_strided_slice %0 {offsets = [1, 0], sizes = [1, 128], strides = [1, 1]} : vector<9x128xf32> to vector<1x128xf32>
    %292 = vector.broadcast %291 : vector<1x128xf32> to vector<8x128xf32>
    %293 = arith.mulf %290, %292 : vector<8x128xf32>
    %c7_i32_106 = arith.constant 7 : i32
    %294 = tpu.dynamic_rotate %285 by %c7_i32_106 dim 1 : vector<8x128xf32>, i32 -> vector<8x128xf32>
    %295 = vector.extract_strided_slice %0 {offsets = [2, 0], sizes = [1, 128], strides = [1, 1]} : vector<9x128xf32> to vector<1x128xf32>
    %296 = vector.broadcast %295 : vector<1x128xf32> to vector<8x128xf32>
    %297 = arith.mulf %294, %296 : vector<8x128xf32>
    %c1_i32_107 = arith.constant 1 : i32
    %298 = tpu.dynamic_rotate %285 by %c1_i32_107 dim 1 : vector<8x128xf32>, i32 -> vector<8x128xf32>
    %299 = vector.extract_strided_slice %0 {offsets = [3, 0], sizes = [1, 128], strides = [1, 1]} : vector<9x128xf32> to vector<1x128xf32>
    %300 = vector.broadcast %299 : vector<1x128xf32> to vector<8x128xf32>
    %301 = arith.mulf %298, %300 : vector<8x128xf32>
    %c127_i32_108 = arith.constant 127 : i32
    %302 = tpu.dynamic_rotate %285 by %c127_i32_108 dim 1 : vector<8x128xf32>, i32 -> vector<8x128xf32>
    %303 = vector.extract_strided_slice %0 {offsets = [5, 0], sizes = [1, 128], strides = [1, 1]} : vector<9x128xf32> to vector<1x128xf32>
    %304 = vector.broadcast %303 : vector<1x128xf32> to vector<8x128xf32>
    %305 = arith.mulf %302, %304 : vector<8x128xf32>
    %c121_i32_109 = arith.constant 121 : i32
    %306 = tpu.dynamic_rotate %285 by %c121_i32_109 dim 1 : vector<8x128xf32>, i32 -> vector<8x128xf32>
    %307 = vector.extract_strided_slice %0 {offsets = [6, 0], sizes = [1, 128], strides = [1, 1]} : vector<9x128xf32> to vector<1x128xf32>
    %308 = vector.broadcast %307 : vector<1x128xf32> to vector<8x128xf32>
    %309 = arith.mulf %306, %308 : vector<8x128xf32>
    %c120_i32_110 = arith.constant 120 : i32
    %310 = tpu.dynamic_rotate %285 by %c120_i32_110 dim 1 : vector<8x128xf32>, i32 -> vector<8x128xf32>
    %311 = vector.extract_strided_slice %0 {offsets = [7, 0], sizes = [1, 128], strides = [1, 1]} : vector<9x128xf32> to vector<1x128xf32>
    %312 = vector.broadcast %311 : vector<1x128xf32> to vector<8x128xf32>
    %313 = arith.mulf %310, %312 : vector<8x128xf32>
    %c119_i32_111 = arith.constant 119 : i32
    %314 = tpu.dynamic_rotate %285 by %c119_i32_111 dim 1 : vector<8x128xf32>, i32 -> vector<8x128xf32>
    %315 = vector.extract_strided_slice %0 {offsets = [8, 0], sizes = [1, 128], strides = [1, 1]} : vector<9x128xf32> to vector<1x128xf32>
    %316 = vector.broadcast %315 : vector<1x128xf32> to vector<8x128xf32>
    %317 = arith.mulf %314, %316 : vector<8x128xf32>
    %318 = tpu.concatenate %289, %293, %297, %301, %285, %305, %309, %313, %317 in 0 : vector<8x128xf32>, vector<8x128xf32>, vector<8x128xf32>, vector<8x128xf32>, vector<8x128xf32>, vector<8x128xf32>, vector<8x128xf32>, vector<8x128xf32>, vector<8x128xf32> -> vector<72x128xf32>
    %319 = arith.truncf %318 : vector<72x128xf32> to vector<72x128xbf16>
    %cst_112 = arith.constant dense<0.000000e+00> : vector<8x128xf32>
    %320 = tpu.matmul %22, %319, %cst_112 {dimension_numbers = #tpu.dot_dimension_numbers<[1], [0], [0], [1], [0, 0, 1, 1], [], []>} : vector<8x72xbf16>, vector<72x128xbf16>, vector<8x128xf32> -> vector<8x128xf32>
    %321 = vector.broadcast %21 : vector<8x1xf32> to vector<8x128xf32>
    %322 = arith.addf %320, %321 : vector<8x128xf32>
    %cst_113 = arith.constant 0.000000e+00 : f32
    %323 = vector.broadcast %cst_113 : f32 to vector<8x128xf32>
    %324 = arith.maximumf %322, %323 : vector<8x128xf32>
    %c9_i32_114 = arith.constant 9 : i32
    %325 = tpu.dynamic_rotate %324 by %c9_i32_114 dim 1 : vector<8x128xf32>, i32 -> vector<8x128xf32>
    %326 = vector.extract_strided_slice %0 {offsets = [0, 0], sizes = [1, 128], strides = [1, 1]} : vector<9x128xf32> to vector<1x128xf32>
    %327 = vector.broadcast %326 : vector<1x128xf32> to vector<8x128xf32>
    %328 = arith.mulf %325, %327 : vector<8x128xf32>
    %c8_i32_115 = arith.constant 8 : i32
    %329 = tpu.dynamic_rotate %324 by %c8_i32_115 dim 1 : vector<8x128xf32>, i32 -> vector<8x128xf32>
    %330 = vector.extract_strided_slice %0 {offsets = [1, 0], sizes = [1, 128], strides = [1, 1]} : vector<9x128xf32> to vector<1x128xf32>
    %331 = vector.broadcast %330 : vector<1x128xf32> to vector<8x128xf32>
    %332 = arith.mulf %329, %331 : vector<8x128xf32>
    %c7_i32_116 = arith.constant 7 : i32
    %333 = tpu.dynamic_rotate %324 by %c7_i32_116 dim 1 : vector<8x128xf32>, i32 -> vector<8x128xf32>
    %334 = vector.extract_strided_slice %0 {offsets = [2, 0], sizes = [1, 128], strides = [1, 1]} : vector<9x128xf32> to vector<1x128xf32>
    %335 = vector.broadcast %334 : vector<1x128xf32> to vector<8x128xf32>
    %336 = arith.mulf %333, %335 : vector<8x128xf32>
    %c1_i32_117 = arith.constant 1 : i32
    %337 = tpu.dynamic_rotate %324 by %c1_i32_117 dim 1 : vector<8x128xf32>, i32 -> vector<8x128xf32>
    %338 = vector.extract_strided_slice %0 {offsets = [3, 0], sizes = [1, 128], strides = [1, 1]} : vector<9x128xf32> to vector<1x128xf32>
    %339 = vector.broadcast %338 : vector<1x128xf32> to vector<8x128xf32>
    %340 = arith.mulf %337, %339 : vector<8x128xf32>
    %c127_i32_118 = arith.constant 127 : i32
    %341 = tpu.dynamic_rotate %324 by %c127_i32_118 dim 1 : vector<8x128xf32>, i32 -> vector<8x128xf32>
    %342 = vector.extract_strided_slice %0 {offsets = [5, 0], sizes = [1, 128], strides = [1, 1]} : vector<9x128xf32> to vector<1x128xf32>
    %343 = vector.broadcast %342 : vector<1x128xf32> to vector<8x128xf32>
    %344 = arith.mulf %341, %343 : vector<8x128xf32>
    %c121_i32_119 = arith.constant 121 : i32
    %345 = tpu.dynamic_rotate %324 by %c121_i32_119 dim 1 : vector<8x128xf32>, i32 -> vector<8x128xf32>
    %346 = vector.extract_strided_slice %0 {offsets = [6, 0], sizes = [1, 128], strides = [1, 1]} : vector<9x128xf32> to vector<1x128xf32>
    %347 = vector.broadcast %346 : vector<1x128xf32> to vector<8x128xf32>
    %348 = arith.mulf %345, %347 : vector<8x128xf32>
    %c120_i32_120 = arith.constant 120 : i32
    %349 = tpu.dynamic_rotate %324 by %c120_i32_120 dim 1 : vector<8x128xf32>, i32 -> vector<8x128xf32>
    %350 = vector.extract_strided_slice %0 {offsets = [7, 0], sizes = [1, 128], strides = [1, 1]} : vector<9x128xf32> to vector<1x128xf32>
    %351 = vector.broadcast %350 : vector<1x128xf32> to vector<8x128xf32>
    %352 = arith.mulf %349, %351 : vector<8x128xf32>
    %c119_i32_121 = arith.constant 119 : i32
    %353 = tpu.dynamic_rotate %324 by %c119_i32_121 dim 1 : vector<8x128xf32>, i32 -> vector<8x128xf32>
    %354 = vector.extract_strided_slice %0 {offsets = [8, 0], sizes = [1, 128], strides = [1, 1]} : vector<9x128xf32> to vector<1x128xf32>
    %355 = vector.broadcast %354 : vector<1x128xf32> to vector<8x128xf32>
    %356 = arith.mulf %353, %355 : vector<8x128xf32>
    %357 = tpu.concatenate %328, %332, %336, %340, %324, %344, %348, %352, %356 in 0 : vector<8x128xf32>, vector<8x128xf32>, vector<8x128xf32>, vector<8x128xf32>, vector<8x128xf32>, vector<8x128xf32>, vector<8x128xf32>, vector<8x128xf32>, vector<8x128xf32> -> vector<72x128xf32>
    %358 = arith.truncf %357 : vector<72x128xf32> to vector<72x128xbf16>
    %cst_122 = arith.constant dense<0.000000e+00> : vector<8x128xf32>
    %359 = tpu.matmul %24, %358, %cst_122 {dimension_numbers = #tpu.dot_dimension_numbers<[1], [0], [0], [1], [0, 0, 1, 1], [], []>} : vector<8x72xbf16>, vector<72x128xbf16>, vector<8x128xf32> -> vector<8x128xf32>
    %360 = vector.broadcast %23 : vector<8x1xf32> to vector<8x128xf32>
    %361 = arith.addf %359, %360 : vector<8x128xf32>
    %362 = arith.addf %361, %285 : vector<8x128xf32>
    %cst_123 = arith.constant 0.000000e+00 : f32
    %363 = vector.broadcast %cst_123 : f32 to vector<8x128xf32>
    %364 = arith.maximumf %362, %363 : vector<8x128xf32>
    %365 = tpu.concatenate %364, %285, %112, %206 in 0 : vector<8x128xf32>, vector<8x128xf32>, vector<8x128xf32>, vector<8x128xf32> -> vector<32x128xf32>
    %366 = arith.truncf %365 : vector<32x128xf32> to vector<32x128xbf16>
    %cst_124 = arith.constant dense<0.000000e+00> : vector<8x128xf32>
    %367 = tpu.matmul %16, %366, %cst_124 {dimension_numbers = #tpu.dot_dimension_numbers<[1], [0], [0], [1], [0, 0, 1, 1], [], []>} : vector<8x32xbf16>, vector<32x128xbf16>, vector<8x128xf32> -> vector<8x128xf32>
    %368 = vector.broadcast %15 : vector<8x1xf32> to vector<8x128xf32>
    %369 = arith.addf %367, %368 : vector<8x128xf32>
    %370 = arith.addf %369, %364 : vector<8x128xf32>
    %cst_125 = arith.constant 0.000000e+00 : f32
    %371 = vector.broadcast %cst_125 : f32 to vector<8x128xf32>
    %372 = arith.maximumf %370, %371 : vector<8x128xf32>
    %c0_126 = arith.constant 0 : index
    %c0_127 = arith.constant 0 : index
    %c0_128 = arith.constant 0 : index
    %373 = vector.load %arg27[%c0_126, %c0_127, %c0_128] : memref<1x8x128xf32, #tpu.memory_space<vmem>>, vector<1x8x128xf32>
    %374 = vector.shape_cast %373 : vector<1x8x128xf32> to vector<8x128xf32>
    %375 = vector.shape_cast %372 : vector<8x128xf32> to vector<1x8x128xf32>
    tpu.vector_store %arg27[%c0_126, %c0_127, %c0_128], %375 {strides = array<i32>} : memref<1x8x128xf32, #tpu.memory_space<vmem>>, vector<1x8x128xf32>,
    return
  }
  func.func @transform_0(%arg0: i32) -> (i32, i32, i32) {
    %c0_i32 = arith.constant 0 : i32
    %c0_i32_0 = arith.constant 0 : i32
    %c0_i32_1 = arith.constant 0 : i32
    return %arg0, %c0_i32, %c0_i32_0 : i32, i32, i32
  }
  func.func @transform_1(%arg0: i32) -> (i32, i32) {
    %c0_i32 = arith.constant 0 : i32
    %c0_i32_0 = arith.constant 0 : i32
    %c0_i32_1 = arith.constant 0 : i32
    return %c0_i32, %c0_i32_0 : i32, i32
  }
  func.func @transform_2(%arg0: i32) -> (i32, i32) {
    %c0_i32 = arith.constant 0 : i32
    %c0_i32_0 = arith.constant 0 : i32
    %c0_i32_1 = arith.constant 0 : i32
    return %c0_i32, %c0_i32_0 : i32, i32
  }
  func.func @transform_3(%arg0: i32) -> (i32, i32) {
    %c0_i32 = arith.constant 0 : i32
    %c0_i32_0 = arith.constant 0 : i32
    %c0_i32_1 = arith.constant 0 : i32
    return %c0_i32, %c0_i32_0 : i32, i32
  }
  func.func @transform_4(%arg0: i32) -> (i32, i32) {
    %c0_i32 = arith.constant 0 : i32
    %c0_i32_0 = arith.constant 0 : i32
    %c0_i32_1 = arith.constant 0 : i32
    return %c0_i32, %c0_i32_0 : i32, i32
  }
  func.func @transform_5(%arg0: i32) -> (i32, i32) {
    %c0_i32 = arith.constant 0 : i32
    %c0_i32_0 = arith.constant 0 : i32
    %c0_i32_1 = arith.constant 0 : i32
    return %c0_i32, %c0_i32_0 : i32, i32
  }
  func.func @transform_6(%arg0: i32) -> (i32, i32) {
    %c0_i32 = arith.constant 0 : i32
    %c0_i32_0 = arith.constant 0 : i32
    %c0_i32_1 = arith.constant 0 : i32
    return %c0_i32, %c0_i32_0 : i32, i32
  }
  func.func @transform_7(%arg0: i32) -> (i32, i32) {
    %c0_i32 = arith.constant 0 : i32
    %c0_i32_0 = arith.constant 0 : i32
    %c0_i32_1 = arith.constant 0 : i32
    return %c0_i32, %c0_i32_0 : i32, i32
  }
  func.func @transform_8(%arg0: i32) -> (i32, i32) {
    %c0_i32 = arith.constant 0 : i32
    %c0_i32_0 = arith.constant 0 : i32
    %c0_i32_1 = arith.constant 0 : i32
    return %c0_i32, %c0_i32_0 : i32, i32
  }
  func.func @transform_9(%arg0: i32) -> (i32, i32) {
    %c0_i32 = arith.constant 0 : i32
    %c0_i32_0 = arith.constant 0 : i32
    %c0_i32_1 = arith.constant 0 : i32
    return %c0_i32, %c0_i32_0 : i32, i32
  }
  func.func @transform_10(%arg0: i32) -> (i32, i32) {
    %c0_i32 = arith.constant 0 : i32
    %c0_i32_0 = arith.constant 0 : i32
    %c0_i32_1 = arith.constant 0 : i32
    return %c0_i32, %c0_i32_0 : i32, i32
  }
  func.func @transform_11(%arg0: i32) -> (i32, i32) {
    %c0_i32 = arith.constant 0 : i32
    %c0_i32_0 = arith.constant 0 : i32
    %c0_i32_1 = arith.constant 0 : i32
    return %c0_i32, %c0_i32_0 : i32, i32
  }
  func.func @transform_12(%arg0: i32) -> (i32, i32) {
    %c0_i32 = arith.constant 0 : i32
    %c0_i32_0 = arith.constant 0 : i32
    %c0_i32_1 = arith.constant 0 : i32
    return %c0_i32, %c0_i32_0 : i32, i32
  }
  func.func @transform_13(%arg0: i32) -> (i32, i32) {
    %c0_i32 = arith.constant 0 : i32
    %c0_i32_0 = arith.constant 0 : i32
    %c0_i32_1 = arith.constant 0 : i32
    return %c0_i32, %c0_i32_0 : i32, i32
  }
  func.func @transform_14(%arg0: i32) -> (i32, i32) {
    %c0_i32 = arith.constant 0 : i32
    %c0_i32_0 = arith.constant 0 : i32
    %c0_i32_1 = arith.constant 0 : i32
    return %c0_i32, %c0_i32_0 : i32, i32
  }
  func.func @transform_15(%arg0: i32) -> (i32, i32) {
    %c0_i32 = arith.constant 0 : i32
    %c0_i32_0 = arith.constant 0 : i32
    %c0_i32_1 = arith.constant 0 : i32
    return %c0_i32, %c0_i32_0 : i32, i32
  }
  func.func @transform_16(%arg0: i32) -> (i32, i32) {
    %c0_i32 = arith.constant 0 : i32
    %c0_i32_0 = arith.constant 0 : i32
    %c0_i32_1 = arith.constant 0 : i32
    return %c0_i32, %c0_i32_0 : i32, i32
  }
  func.func @transform_17(%arg0: i32) -> (i32, i32) {
    %c0_i32 = arith.constant 0 : i32
    %c0_i32_0 = arith.constant 0 : i32
    %c0_i32_1 = arith.constant 0 : i32
    return %c0_i32, %c0_i32_0 : i32, i32
  }
  func.func @transform_18(%arg0: i32) -> (i32, i32) {
    %c0_i32 = arith.constant 0 : i32
    %c0_i32_0 = arith.constant 0 : i32
    %c0_i32_1 = arith.constant 0 : i32
    return %c0_i32, %c0_i32_0 : i32, i32
  }
  func.func @transform_19(%arg0: i32) -> (i32, i32) {
    %c0_i32 = arith.constant 0 : i32
    %c0_i32_0 = arith.constant 0 : i32
    %c0_i32_1 = arith.constant 0 : i32
    return %c0_i32, %c0_i32_0 : i32, i32
  }
  func.func @transform_20(%arg0: i32) -> (i32, i32) {
    %c0_i32 = arith.constant 0 : i32
    %c0_i32_0 = arith.constant 0 : i32
    %c0_i32_1 = arith.constant 0 : i32
    return %c0_i32, %c0_i32_0 : i32, i32
  }
  func.func @transform_21(%arg0: i32) -> (i32, i32) {
    %c0_i32 = arith.constant 0 : i32
    %c0_i32_0 = arith.constant 0 : i32
    %c0_i32_1 = arith.constant 0 : i32
    return %c0_i32, %c0_i32_0 : i32, i32
  }
  func.func @transform_22(%arg0: i32) -> (i32, i32) {
    %c0_i32 = arith.constant 0 : i32
    %c0_i32_0 = arith.constant 0 : i32
    %c0_i32_1 = arith.constant 0 : i32
    return %c0_i32, %c0_i32_0 : i32, i32
  }
  func.func @transform_23(%arg0: i32) -> (i32, i32) {
    %c0_i32 = arith.constant 0 : i32
    %c0_i32_0 = arith.constant 0 : i32
    %c0_i32_1 = arith.constant 0 : i32
    return %c0_i32, %c0_i32_0 : i32, i32
  }
  func.func @transform_24(%arg0: i32) -> (i32, i32) {
    %c0_i32 = arith.constant 0 : i32
    %c0_i32_0 = arith.constant 0 : i32
    %c0_i32_1 = arith.constant 0 : i32
    return %c0_i32, %c0_i32_0 : i32, i32
  }
  func.func @transform_25(%arg0: i32) -> (i32, i32) {
    %c0_i32 = arith.constant 0 : i32
    %c0_i32_0 = arith.constant 0 : i32
    %c0_i32_1 = arith.constant 0 : i32
    return %c0_i32, %c0_i32_0 : i32, i32
  }
  func.func @transform_26(%arg0: i32) -> (i32, i32, i32) {
    %c0_i32 = arith.constant 0 : i32
    %c0_i32_0 = arith.constant 0 : i32
    %c0_i32_1 = arith.constant 0 : i32
    return %arg0, %c0_i32, %c0_i32_0 : i32, i32, i32
  }
}

</mosaic_0001>

<bundles_post_ra>
// kernel: forward.1
= control target key start
LH: loop header
LB: loop body
LE: loop exit
PB: predicated region body
PF: predicated region fallthrough
CT: control target
= control target key end

     0   :  { %s2522_s27 = smov 0   ;;  %s3075_s0 = inlined_call_operand.vmem [shape: f32[2,8,256], index: 0, kind: input, shape index: {}]   ;;  %s3076_s1 = inlined_call_operand.vmem [shape: f32[9,128], index: 1, kind: input, shape index: {}]   ;;  %s3077_s2 = inlined_call_operand.vmem [shape: f32[9,256], index: 2, kind: input, shape index: {}]   ;;  %s3078_s3 = inlined_call_operand.vmem [shape: bf16[256,128], index: 3, kind: input, shape index: {}]   ;;  %s3079_s4 = inlined_call_operand.vmem [shape: f32[8,1], index: 4, kind: input, shape index: {}, may-alias: {4,6,8,10,12,14,16,18,20,22,24}]   ;;  %s3080_s5 = inlined_call_operand.vmem [shape: bf16[8,16], index: 5, kind: input, shape index: {}]   ;;  %s3081_s6 = inlined_call_operand.vmem [shape: f32[8,1], index: 6, kind: input, shape index: {}, may-alias: {4,6,8,10,12,14,16,18,20,22,24}]   ;;  %s3082_s7 = inlined_call_operand.vmem [shape: bf16[8,72], index: 7, kind: input, shape index: {}]   ;;  %s3083_s8 = inlined_call_operand.vmem [shape: f32[8,1], index: 8, kind: input, shape index: {}, may-alias: {4,6,8,10,12,14,16,18,20,22,24}]   ;;  %s3084_s9 = inlined_call_operand.vmem [shape: bf16[8,72], index: 9, kind: input, shape index: {}]   ;;  %s3085_s10 = inlined_call_operand.vmem [shape: f32[8,1], index: 10, kind: input, shape index: {}, may-alias: {4,6,8,10,12,14,16,18,20,22,24}]   ;;  %s3086_s11 = inlined_call_operand.vmem [shape: bf16[8,8], index: 11, kind: input, shape index: {}]   ;;  %s3087_s12 = inlined_call_operand.vmem [shape: f32[8,1], index: 12, kind: input, shape index: {}, may-alias: {4,6,8,10,12,14,16,18,20,22,24}]   ;;  %s3088_s13 = inlined_call_operand.vmem [shape: bf16[8,72], index: 13, kind: input, shape index: {}]   ;;  %s3089_s14 = inlined_call_operand.vmem [shape: f32[8,1], index: 14, kind: input, shape index: {}, may-alias: {4,6,8,10,12,14,16,18,20,22,24}]   ;;  %s3090_s15 = inlined_call_operand.vmem [shape: bf16[8,72], index: 15, kind: input, shape index: {}]   ;;  %s3091_s16 = inlined_call_operand.vmem [shape: f32[8,1], index: 16, kind: input, shape index: {}, may-alias: {4,6,8,10,12,14,16,18,20,22,24}]   ;;  %s3092_s17 = inlined_call_operand.vmem [shape: bf16[8,32], index: 17, kind: input, shape index: {}]   ;;  %s3093_s18 = inlined_call_operand.vmem [shape: f32[8,1], index: 18, kind: input, shape index: {}, may-alias: {4,6,8,10,12,14,16,18,20,22,24}]   ;;  %s3094_s19 = inlined_call_operand.vmem [shape: bf16[8,72], index: 19, kind: input, shape index: {}]   ;;  %s3095_s20 = inlined_call_operand.vmem [shape: f32[8,1], index: 20, kind: input, shape index: {}, may-alias: {4,6,8,10,12,14,16,18,20,22,24}]   ;;  %s3096_s21 = inlined_call_operand.vmem [shape: bf16[8,72], index: 21, kind: input, shape index: {}]   ;;  %s3097_s22 = inlined_call_operand.vmem [shape: f32[8,1], index: 22, kind: input, shape index: {}, may-alias: {4,6,8,10,12,14,16,18,20,22,24}]   ;;  %s3098_s23 = inlined_call_operand.vmem [shape: bf16[8,72], index: 23, kind: input, shape index: {}]   ;;  %s3099_s24 = inlined_call_operand.vmem [shape: f32[8,1], index: 24, kind: input, shape index: {}, may-alias: {4,6,8,10,12,14,16,18,20,22,24}]   ;;  %s3100_s25 = inlined_call_operand.vmem [shape: bf16[8,72], index: 25, kind: input, shape index: {}]   ;;  %s3101_s26 = inlined_call_operand.vmem [shape: f32[2,8,128], index: 26, kind: output, shape index: {}]  }
   0x1   :  { %3117 = sst [smem:[#allocation2_spill]] %s3075_s0 }
   0x2   :  { %3118 = sst [smem:[#allocation3_spill]] %s3076_s1 }
   0x3   :  { %3119 = sst [smem:[#allocation4_spill]] %s3077_s2 }
   0x4   :  { %3120 = sst [smem:[#allocation5_spill]] %s3078_s3 }
   0x5   :  { %3121 = sst [smem:[#allocation6_spill]] %s3079_s4 }
   0x6   :  { %3122 = sst [smem:[#allocation7_spill]] %s3080_s5 }
   0x7   :  { %3123 = sst [smem:[#allocation8_spill]] %s3081_s6 }
   0x8   :  { %3124 = sst [smem:[#allocation9_spill]] %s3082_s7 }
   0x9   :  { %3125 = sst [smem:[#allocation10_spill]] %s3083_s8 }
   0xa   :  { %3126 = sst [smem:[#allocation11_spill]] %s3084_s9 }
   0xb   :  { %3127 = sst [smem:[#allocation12_spill]] %s3085_s10 }
   0xc LB: > { %s2060_s3 = sadd.s32 4294967295, %s2368_s27   ;;  %p2064_p0 = scmp.ge.s32.totalorder %s2368_s27, 1  ;;  %s2368_s27 = sphi %s2522_s27, %s36_s27  }
   0xd   : > { %p712_p1 = scmp.lt.s32.totalorder %s2368_s27, 3 }
   0xf   : > { %p713_p2 = pnand %p2064_p0, %p712_p1 }
  0x10   : > { %p781_p3 = scmp.lt.s32.totalorder (!%p713_p2), %s2060_s3, 1  ;;  %s3128_s4 = sld [smem:[#allocation2_spill]] (!%p713_p2)  ;;  %v2376_v2 = vmov (!%p713_p2), 0   ;;  %v857_v17 = vlaneseq (!%p713_p2)  ;;  %vm1005_vm8 = vcmask (!%p713_p2), 1043456   ;;  %vm1001_vm9 = vcmask (!%p713_p2), 588800  }
  0x11   : > { %716 = sbr.rel (%p713_p2) target bundleno = 3566 (0xdee), region = 124  ;;  %s2370_s0 = smov (!%p713_p2), 16   ;;  %1044 = vmatprep.mubr.bf16.mxu0 (!%p713_p2), %v2376_v2  ;;  %2344 = vset.pattern.permute.xlu0 (!%p713_p2), %v2376_v2  ;;  %vm2385_vm10 = vmmov (!%p713_p2), 0   ;;  %vm1363_vm11 = vcmask (!%p713_p2), 64512   ;;  %vm1581_vm12 = vcmask (!%p713_p2), 130048   ;;  %vm1960_vm13 = vcmask (!%p713_p2), 261120  }
  0x12   : > { %s2371_s9 = smov (!%p713_p2), 17   ;;  %s2372_s30 = smov (!%p713_p2), 15   ;;  %2345 = vset.pattern.permute.xlu1 (!%p713_p2), %v2376_v2  ;;  %v863_v18 = vshrl.u32 (!%p713_p2), %v857_v17, 7  ;;  %v2644_v19 = vand.u32 (!%p713_p2), 127, %v857_v17 }
  0x13   : > { %s3105_s2 = smov (!%p713_p2), 1   ;;  %s3109_s5 = smov (!%p713_p2), 127  }
  0x14   : > { %s2375_s10 = smov (!%p713_p2), 113   ;;  %s2377_s6 = smov (!%p713_p2), 112   ;;  %v2646_v20 = vsub.s32 (!%p713_p2), 1, %v863_v18  ;;  %v2648_v21 = vsub.s32 (!%p713_p2), 0, %v863_v18  ;;  %vm876_vm0 = vcmp.lt.s32.totalorder (!%p713_p2), %v2644_v19, 16  ;;  %vm859_vm1 = vcmp.lt.s32.totalorder (!%p713_p2), %v2644_v19, 17 }
  0x15   : > { %s3129_s28 = sld [smem:[#allocation5_spill]] (!%p713_p2)  ;;  %v2670_v32 = vsub.s32 (!%p713_p2), 2, %v863_v18  ;;  %v2672_v33 = vsub.s32 (!%p713_p2), 3, %v863_v18  ;;  %vm893_vm2 = vcmp.lt.s32.totalorder (!%p713_p2), %v2644_v19, 15  ;;  %vm910_vm3 = vcmp.lt.s32.totalorder (!%p713_p2), %v2644_v19, 1  ;;  %s3131_s1 = sld [smem:[#allocation9_spill]] (!%p713_p2) }
  0x16   : > { %v2676_v46 = vsub.s32 (!%p713_p2), 5, %v863_v18  ;;  %vm927_vm4 = vcmp.lt.s32.totalorder (!%p713_p2), %v2644_v19, 127  ;;  %vm944_vm5 = vcmp.lt.s32.totalorder (!%p713_p2), %v2644_v19, 113  ;;  %vm961_vm6 = vcmp.lt.s32.totalorder (!%p713_p2), %v2644_v19, 112  ;;  %s3133_s8 = smov (!%p713_p2), 1  }
  0x17   : > { %vm978_vm7 = vcmp.lt.s32.totalorder (!%p713_p2), %v2644_v19, 111 }
  0x18   : > { %s3145_s3 = smov (!%p781_p3, %s2060_s3), 1 }
  0x19   : > { %s2101_s7 = sshll.u32 %s3145_s3, 4 }
  0x1a   : > { %s785_s29 = scalar_lea.vmem %s3128_s4, %s2101_s7  ;;  %s3130_s7 = sld [smem:[#allocation4_spill]] }
  0x1b   : > { %v2536_v0 = vld [vmem:[%s785_s29] sm:$0xff]  ;;  %v2538_v1 = vld [vmem:[%s785_s29 + $0x8] sm:$0xff]  ;;  %v2585_v7 = vld [vmem:[%s3129_s28 + $0x50] sm:$0xff]   ;;  %s3137_s29 = sld [smem:[#allocation11_spill]]  ;;  %s3139_s4 = smov 127  }
  0x1c   : > { %872 = vrot.lane.b32.xlu1 %v2536_v0, %s2370_s0  ;;  %853 = vrot.lane.b32.xlu0 %v2536_v0, %s2371_s9  ;;  %v2561_v3 = vld [vmem:[%s3129_s28 + $0x40] sm:$0xff]   ;;  %v2571_v5 = vld [vmem:[%s3129_s28 + $0x48] sm:$0xff]  }
  0x1d   : > { %v2566_v4 = vld [vmem:[%s3129_s28] sm:$0xff]   ;;  %2102 = vmatprep.subr.bf16.mxu1 %v2561_v3  ;;  %v2578_v6 = vld [vmem:[%s3129_s28 + $0x8] sm:$0xff]   ;;  %v2592_v8 = vld [vmem:[%s3129_s28 + $0x10] sm:$0xff]  }
  0x1e   : > { %2103 = vmatpush3.bf16.msra.mxu1 %v2566_v4  ;;  %v2598_v9 = vld [vmem:[%s3129_s28 + $0x58] sm:$0xff]   ;;  %v2610_v11 = vld [vmem:[%s3129_s28 + $0x60] sm:$0xff]   ;;  %v2622_v13 = vld [vmem:[%s3129_s28 + $0x68] sm:$0xff]  }
  0x1f   : > { %2104 = vmatprep.subr.bf16.mxu1 %v2571_v5  ;;  %v2604_v10 = vld [vmem:[%s3129_s28 + $0x18] sm:$0xff]   ;;  %v2616_v12 = vld [vmem:[%s3129_s28 + $0x20] sm:$0xff]   ;;  %v2628_v14 = vld [vmem:[%s3129_s28 + $0x28] sm:$0xff]  }
  0x20   : > { %874 = vrot.lane.b32.xlu1 %v2538_v1, %s2370_s0  ;;  %855 = vrot.lane.b32.xlu0 %v2538_v1, %s2371_s9  ;;  %v2634_v15 = vld [vmem:[%s3129_s28 + $0x70] sm:$0xff]   ;;  %v2653_v22 = vld [vmem:[%s3130_s7] sm:$0xff]  ;;  %s3134_s0 = sld [smem:[#allocation10_spill]]  ;;  %s2384_s9 = smov 121  }
  0x21   : > { %v2640_v16 = vld [vmem:[%s3129_s28 + $0x30] sm:$0xff]   ;;  %v2658_v23 = vld [vmem:[%s3130_s7 + $0x8] sm:$0xff]  ;;  %v882_v26 = vrot.slane %v2653_v22, %v2646_v20  ;;  %v865_v27 = vrot.slane %v2653_v22, %v2648_v21  ;;  %v899_v47 = vrot.slane %v2653_v22, %v2670_v32  ;;  %v916_v49 = vrot.slane %v2653_v22, %v2672_v33  ;;  %v2360_v19 = vld [vmem:[%s3129_s28 + $0x78] sm:$0xff]  }
  0x22   : > { %2105 = vmatpush3.bf16.msra.mxu1 %v2578_v6  ;;  %v869_v28 = vrot.slane %v2658_v23, %v2648_v21  ;;  %v886_v29 = vrot.slane %v2658_v23, %v2646_v20  ;;  %v903_v48 = vrot.slane %v2658_v23, %v2670_v32  ;;  %v920_v50 = vrot.slane %v2658_v23, %v2672_v33 }
  0x23   : > { %2106 = vmatprep.subr.bf16.mxu1 %v2585_v7  ;;  %v933_v57 = vrot.slane %v2653_v22, %v2676_v46  ;;  %v937_v58 = vrot.slane %v2658_v23, %v2676_v46 }
  0x24   : > { %891 = vrot.lane.b32.xlu1 %v2538_v1, %s2372_s30  ;;  %889 = vrot.lane.b32.xlu0 %v2536_v0, %s2372_s30  ;;  %s2386_s30 = smov 119  }
  0x26   : > { %2107 = vmatpush3.bf16.msra.mxu1 %v2592_v8 }
  0x27   : > { %2108 = vmatprep.subr.bf16.mxu1 %v2598_v9 }
  0x28   : > { %908 = vrot.lane.b32.xlu1 %v2538_v1, %s3105_s2  ;;  %906 = vrot.lane.b32.xlu0 %v2536_v0, %s3105_s2  ;;  %s3132_s2 = sld [smem:[#allocation8_spill]] }
  0x2a   : > { %2109 = vmatpush3.bf16.msra.mxu1 %v2604_v10 }
  0x2b   : > { %2110 = vmatprep.subr.bf16.mxu1 %v2610_v11 }
  0x2c   : > { %925 = vrot.lane.b32.xlu1 %v2538_v1, %s3109_s5  ;;  %923 = vrot.lane.b32.xlu0 %v2536_v0, %s3109_s5 }
  0x2e   : > { %2111 = vmatpush3.bf16.msra.mxu1 %v2616_v12 }
  0x2f   : > { %2112 = vmatprep.subr.bf16.mxu1 %v2622_v13 }
  0x30   : > { %942 = vrot.lane.b32.xlu1 %v2538_v1, %s2375_s10  ;;  %940 = vrot.lane.b32.xlu0 %v2536_v0, %s2375_s10  ;;  %s2378_s10 = smov 111  }
  0x32   : > { %2113 = vmatpush3.bf16.msra.mxu1 %v2628_v14 }
  0x33   : > { %2114 = vmatprep.subr.bf16.mxu1 %v2634_v15 }
  0x34   : > { %959 = vrot.lane.b32.xlu1 %v2538_v1, %s2377_s6  ;;  %957 = vrot.lane.b32.xlu0 %v2536_v0, %s2377_s6  ;;  %s3115_s6 = smov 8  }
  0x36   : > { %2115 = vmatpush3.bf16.msra.mxu1 %v2640_v16 }
  0x37   : > { %2116 = vmatprep.subr.bf16.mxu1 %v2360_v19 }
  0x38   : > { %976 = vrot.lane.b32.xlu1 %v2538_v1, %s2378_s10  ;;  %974 = vrot.lane.b32.xlu0 %v2536_v0, %s2378_s10  ;;  %s2381_s10 = smov 9  }
  0x8e   : > { %v873_v24 = vpop.permute.xlu1 %872  ;;  %v854_v25 = vpop.permute.xlu0 %853 }
  0x92   : > { %v875_v30 = vpop.permute.xlu1 %874  ;;  %v856_v31 = vpop.permute.xlu0 %855 }
  0x93   : > { %v877_v34 = vsel %vm876_vm0, %v873_v24, %v875_v30  ;;  %v878_v35 = vsel %vm876_vm0, %v875_v30, %v873_v24  ;;  %v860_v36 = vsel %vm859_vm1, %v854_v25, %v856_v31  ;;  %v861_v37 = vsel %vm859_vm1, %v856_v31, %v854_v25 }
  0x94   : > { %v887_v38 = vmul.f32 %v882_v26, %v878_v35  ;;  %v870_v39 = vmul.f32 %v865_v27, %v861_v37  ;;  %v871_v40 = vmul.f32 %v869_v28, %v860_v36  ;;  %v888_v41 = vmul.f32 %v886_v29, %v877_v34 }
  0x95   : > { %v2691_v27 = vsub.s32 6, %v863_v18  ;;  %v2693_v30 = vsub.s32 7, %v863_v18 }
  0x96   : > { %v892_v42 = vpop.permute.xlu1 %891  ;;  %v890_v43 = vpop.permute.xlu0 %889  ;;  %v992_v44 = vpack.c.bf16 %v888_v41, %v871_v40  ;;  %v991_v45 = vpack.c.bf16 %v887_v38, %v870_v39 }
  0x97   : > { %v894_v51 = vsel %vm893_vm2, %v890_v43, %v892_v42  ;;  %v895_v52 = vsel %vm893_vm2, %v892_v42, %v890_v43  ;;  %v950_v37 = vrot.slane %v2653_v22, %v2691_v27  ;;  %v954_v38 = vrot.slane %v2658_v23, %v2691_v27 }
  0x98   : > { %1012 = vmatprep.subr.bf16.mxu0 %v992_v44  ;;  %v904_v59 = vmul.f32 %v899_v47, %v895_v52  ;;  %v905_v60 = vmul.f32 %v903_v48, %v894_v51  ;;  %v967_v40 = vrot.slane %v2653_v22, %v2693_v30  ;;  %v971_v41 = vrot.slane %v2658_v23, %v2693_v30  ;;  %v2068_v23 = vld [vmem:[%s3130_s7 + $0x10] ss:$0 sm:$0xff] }
  0x99   : > { %1013 = vmatpush1.bf16.msra.mxu0 %v991_v45 }
  0x9a   : > { %v909_v53 = vpop.permute.xlu1 %908  ;;  %v907_v54 = vpop.permute.xlu0 %906 }
  0x9b   : > { %v911_v55 = vsel %vm910_vm3, %v907_v54, %v909_v53  ;;  %v912_v56 = vsel %vm910_vm3, %v909_v53, %v907_v54 }
  0x9c   : > { %v921_v61 = vmul.f32 %v916_v49, %v912_v56  ;;  %v922_v62 = vmul.f32 %v920_v50, %v911_v55 }
  0x9e   : > { %v926_v63 = vpop.permute.xlu1 %925  ;;  %v924_v2 = vpop.permute.xlu0 %923  ;;  %v994_v17 = vpack.c.bf16 %v922_v62, %v905_v60  ;;  %v993_v24 = vpack.c.bf16 %v921_v61, %v904_v59 }
  0x9f   : > { %v928_v25 = vsel %vm927_vm4, %v924_v2, %v926_v63  ;;  %v929_v26 = vsel %vm927_vm4, %v926_v63, %v924_v2 }
  0xa0   : > { %v938_v28 = vmul.f32 %v933_v57, %v928_v25  ;;  %v939_v29 = vmul.f32 %v937_v58, %v929_v26  ;;  %1014 = vmatprep.subr.bf16.mxu0 %v994_v17  ;;  %v1309_v42 = vmax.f32 %v2536_v0, %v928_v25  ;;  %v1310_v43 = vmax.f32 %v2538_v1, %v929_v26  ;;  %v2361_v25 = vld [vmem:[%s3129_s28 + $0x38] sm:$0xff]   ;;  %v831_v26 = vld [vmem:[%s3132_s2] sm:$0xff]  ;;  %s3111_s2 = smov 7  }
  0xa1   : > { %1015 = vmatpush1.bf16.msra.mxu0 %v993_v24  ;;  %v832_v24 = vld [vmem:[%s3131_s1] sm:$0xf]  ;;  %2117 = vmatpush3.bf16.msra.mxu1 %v2361_v25  ;;  %s3107_s1 = smov 120  }
  0xa2   : > { %v943_v31 = vpop.permute.xlu1 %942  ;;  %v941_v34 = vpop.permute.xlu0 %940  ;;  %v996_v35 = vpack.c.bf16 %v939_v29, %v2538_v1  ;;  %v995_v36 = vpack.c.bf16 %v938_v28, %v2536_v0  ;;  %v2069_v0 = vld [vmem:[%s3130_s7 + $0x18] ss:$0 sm:$0xff]  ;;  %2130 = vmatprep.subr.bf16.mxu1 %v2561_v3  ;;  %1057 = vperm.xlu0 %2344, %v831_v26   ;;  %s3143_s7 = smov 8  }
  0xa3   : > { %v945_v39 = vsel %vm944_vm5, %v941_v34, %v943_v31  ;;  %v946_v18 = vsel %vm944_vm5, %v943_v31, %v941_v34 }
  0xa4   : > { %1016 = vmatprep.subr.bf16.mxu0 %v996_v35  ;;  %v955_v47 = vmul.f32 %v950_v37, %v945_v39  ;;  %v956_v48 = vmul.f32 %v954_v38, %v946_v18 }
  0xa5   : > { %1017 = vmatpush1.bf16.msra.mxu0 %v995_v36 }
  0xa6   : > { %v960_v44 = vpop.permute.xlu1 %959  ;;  %v958_v45 = vpop.permute.xlu0 %957 }
  0xa7   : > { %v962_v49 = vsel %vm961_vm6, %v958_v45, %v960_v44  ;;  %v963_v50 = vsel %vm961_vm6, %v960_v44, %v958_v45 }
  0xa8   : > { %v972_v51 = vmul.f32 %v967_v40, %v962_v49  ;;  %v973_v52 = vmul.f32 %v971_v41, %v963_v50  ;;  %v1311_v53 = vmax.f32 %v1309_v42, %v962_v49  ;;  %v1312_v22 = vmax.f32 %v1310_v43, %v963_v50 }
  0xaa   : > { %v977_v1 = vpop.permute.xlu1 %976  ;;  %v975_v54 = vpop.permute.xlu0 %974  ;;  %v998_v55 = vpack.c.bf16 %v973_v52, %v956_v48  ;;  %v997_v56 = vpack.c.bf16 %v972_v51, %v955_v47 }
  0xab   : > { %v979_v57 = vsel %vm978_vm7, %v975_v54, %v977_v1  ;;  %v980_v58 = vsel %vm978_vm7, %v977_v1, %v975_v54 }
  0xac   : > { %v989_v59 = vmul.f32 %v2068_v23, %v979_v57  ;;  %v990_v60 = vmul.f32 %v2069_v0, %v980_v58  ;;  %v1313_v61 = vmax.f32 %v1311_v53, %v979_v57  ;;  %v1314_v62 = vmax.f32 %v1312_v22, %v980_v58  ;;  %1018 = vmatprep.subr.bf16.mxu0 %v998_v55 }
  0xad   : > { %1019 = vmatpush1.bf16.msra.mxu0 %v997_v56 }
  0xae   : > { %v999_v63 = vpack.c.bf16 %v989_v59, %v989_v59  ;;  %v1000_v2 = vpack.c.bf16 %v990_v60, %v990_v60  ;;  %v1316_v37 = vpack.c.bf16 %v1314_v62, %v1314_v62  ;;  %v1315_v3 = vpack.c.bf16 %v1313_v61, %v1313_v61  ;;  %v834_v62 = vld [vmem:[%s3137_s29] sm:$0xf]  ;;  %s3140_s29 = smov 120  }
  0xb0   : > { %2070 = vmatprep.subr.msk.bf16.mxu0 %vm1005_vm8, %v1000_v2  ;;  %v1007_v17 = vsel %vm1005_vm8, %v999_v63, 0  ;;  %v836_v2 = vld [vmem:[%s3086_s11] sm:$0xf] }
  0xb1   : > { %1021 = vmatpush1.bf16.msra.mxu0 %v1007_v17 }
  0xb4   : > { %2071 = vmatmul.mubr.msk.bf16.vlgmr.msra.gmra.mrb[0].mxu0 %vm1001_vm9, %v832_v24 }
 0x187   : > { %v1046_v28 = vpop.f32.mrb[0].mxu0 }
 0x188   : > { %v1048_v29 = vpop.f32.mrb[1].mxu0  ;;  %v1053_v35 = vpack.c.bf16 %v1046_v28, %v1046_v28 }
 0x189   : > { %v1050_v31 = vpop.f32.mrb[2].mxu0  ;;  %v1054_v34 = vpack.c.bf16 %v1048_v29, %v1048_v29 }
 0x18a   : > { %v1051_v36 = vpop.f32.mrb[3].mxu0 }
 0x18b   : > { %1188 = vmatprep.mubr.bf16.mxu1 %v1054_v34 }
 0x18c   : > { %1189 = vmatmul.mubr.bf16.vlgmr.msra.gmra.mrb[0].mxu1 %v1053_v35  ;;  %v837_v35 = vld [vmem:[%s3087_s12] sm:$0xff] }
 0x18d   : > { %2131 = vmatpush3.bf16.msra.mxu1 %v2566_v4  ;;  %1349 = vmatprep.mubr.bf16.mxu1 %v1316_v37 }
 0x18e   : > { %2132 = vmatprep.subr.bf16.mxu1 %v2571_v5 }
 0x191   : > { %2133 = vmatpush3.bf16.msra.mxu1 %v2578_v6  ;;  %v1058_v6 = vpop.permute.xlu0 %1057 }
 0x192   : > { %2134 = vmatprep.subr.bf16.mxu1 %v2585_v7 }
 0x195   : > { %2135 = vmatpush3.bf16.msra.mxu1 %v2592_v8 }
 0x196   : > { %2136 = vmatprep.subr.bf16.mxu1 %v2598_v9  ;;  %v2379_v9 = vmov 0.0  }
 0x197   : > { %2195 = vmatprep.subr.bf16.mxu0 %v2379_v9  ;;  %2205 = vmatprep.mubr.msk.bf16.mxu0 %vm2385_vm10, %v2379_v9 }
 0x199   : > { %2137 = vmatpush3.bf16.msra.mxu1 %v2604_v10 }
 0x19a   : > { %2138 = vmatprep.subr.bf16.mxu1 %v2610_v11 }
 0x19d   : > { %2139 = vmatpush3.bf16.msra.mxu1 %v2616_v12 }
 0x19e   : > { %2140 = vmatprep.subr.bf16.mxu1 %v2622_v13  ;;  %v833_v13 = vld [vmem:[%s3134_s0] sm:$0xff]  ;;  %s3136_s0 = sld [smem:[#allocation3_spill]] }
 0x1a1   : > { %2141 = vmatpush3.bf16.msra.mxu1 %v2628_v14 }
 0x1a2   : > { %2142 = vmatprep.subr.bf16.mxu1 %v2634_v15 }
 0x1a4   : > { %v791_v40 = vld [vmem:[%s3136_s0] sm:$0xff]  ;;  %v2805_v54 = vld [vmem:[%s3136_s0 + $0x8] ss:$0 sm:$0xff]  ;;  %s3141_s0 = sld [smem:[#allocation6_spill]] }
 0x1a5   : > { %2143 = vmatpush3.bf16.msra.mxu1 %v2640_v16  ;;  %v2775_v42 = vrot.slane %v791_v40, %v2646_v20  ;;  %v2778_v43 = vrot.slane %v791_v40, %v2648_v21  ;;  %v2781_v47 = vrot.slane %v791_v40, %v2670_v32  ;;  %v2784_v48 = vrot.slane %v791_v40, %v2672_v33 }
 0x1a6   : > { %2144 = vmatprep.subr.bf16.mxu1 %v2360_v19  ;;  %v2789_v51 = vrot.slane %v791_v40, %v2676_v46  ;;  %v2795_v32 = vrot.slane %v791_v40, %v2691_v27  ;;  %v2799_v46 = vrot.slane %v791_v40, %v2693_v30 }
 0x1a9   : > { %2145 = vmatpush3.bf16.msra.mxu1 %v2361_v25 }
 0x1aa   : > { %2229 = vmatprep.subr.bf16.mxu1 %v2379_v9 }
 0x1ac   : > { %1350 = vmatmul.mubr.bf16.vlgmr.msra.gmra.mrb[4].mxu1 %v1315_v3 }
 0x1ad   : > { %2239 = vmatprep.mubr.msk.bf16.mxu1 %vm2385_vm10, %v2379_v9 }
 0x25f   : > { %v2118_v4 = vpop.f32.mrb[0].mxu1 }
 0x260   : > { %v2119_v5 = vpop.f32.mrb[1].mxu1 }
 0x261   : > { %v2120_v7 = vadd.f32 %v2119_v5, %v2118_v4  ;;  %v2121_v8 = vpop.f32.mrb[2].mxu1 }
 0x262   : > { %v2122_v10 = vpop.f32.mrb[3].mxu1 }
 0x263   : > { %v1191_v11 = vadd.f32 %v2120_v7, %v1058_v6 }
 0x265   : > { %v1196_v12 = vmax.f32 %v1191_v11, 0.0 }
 0x267   : > { %1211 = vrot.lane.b32.xlu0 %v1196_v12, %s3111_s2  ;;  %1197 = vrot.lane.b32.xlu1 %v1196_v12, %s2381_s10  ;;  %s3135_s2 = sld [smem:[#allocation12_spill]] }
 0x26b   : > { %1225 = vrot.lane.b32.xlu0 %v1196_v12, %s3109_s5  ;;  %1204 = vrot.lane.b32.xlu1 %v1196_v12, %s3115_s6 }
 0x26d   : > { %v835_v14 = vld [vmem:[%s3135_s2] sm:$0xff]  ;;  %s3142_s2 = sld [smem:[#allocation7_spill]] }
 0x26f   : > { %1239 = vrot.lane.b32.xlu0 %v1196_v12, %s3107_s1  ;;  %1218 = vrot.lane.b32.xlu1 %v1196_v12, %s3133_s8  ;;  %s3138_s1 = smov 7  }
 0x273   : > { %1260 = vperm.xlu0 %2344, %v833_v13   ;;  %1232 = vrot.lane.b32.xlu1 %v1196_v12, %s2384_s9 }
 0x277   : > { %1246 = vrot.lane.b32.xlu1 %v1196_v12, %s2386_s30 }
 0x27b   : > { %1360 = vperm.xlu1 %2345, %v835_v14  }
 0x27f   : > { %v2146_v15 = vpop.f32.mrb[4].mxu1 }
 0x280   : > { %v2147_v16 = vpop.f32.mrb[5].mxu1 }
 0x281   : > { %v2769_v38 = vadd.f32 %v2147_v16, %v2146_v15  ;;  %v2149_v39 = vpop.f32.mrb[6].mxu1 }
 0x282   : > { %v2150_v18 = vpop.f32.mrb[7].mxu1 }
 0x283   : > { %v1357_v60 = vpack.c.bf16 %v2769_v38, %v2769_v38 }
 0x285   : > { %v1368_v63 = vsel %vm1005_vm8, %v1357_v60, 0 }
 0x2d9   : > { %v1198_v41 = vpop.permute.xlu1 %1197  ;;  %v1212_v44 = vpop.permute.xlu0 %1211 }
 0x2da   : > { %v1203_v49 = vmul.f32 %v2778_v43, %v1198_v41  ;;  %v1217_v21 = vmul.f32 %v2781_v47, %v1212_v44 }
 0x2dd   : > { %v1205_v45 = vpop.permute.xlu1 %1204  ;;  %v1226_v52 = vpop.permute.xlu0 %1225 }
 0x2de   : > { %v1210_v50 = vmul.f32 %v2775_v42, %v1205_v45  ;;  %v1231_v33 = vmul.f32 %v2789_v51, %v1226_v52 }
 0x2e0   : > { %v1253_v20 = vpack.c.bf16 %v1210_v50, %v1203_v49  ;;  %v1255_v55 = vpack.c.bf16 %v1231_v33, %v1196_v12  ;;  %v838_v50 = vld [vmem:[%s3088_s13] sm:$0xf] }
 0x2e1   : > { %v1219_v53 = vpop.permute.xlu1 %1218  ;;  %v1240_v1 = vpop.permute.xlu0 %1239 }
 0x2e2   : > { %v1224_v22 = vmul.f32 %v2784_v48, %v1219_v53  ;;  %2196 = vmatpush3.bf16.msra.mxu0 %v1253_v20  ;;  %v1245_v57 = vmul.f32 %v2799_v46, %v1240_v1  ;;  %v839_v1 = vld [vmem:[%s3089_s14] sm:$0xff] }
 0x2e3   : > { %2197 = vmatprep.subr.bf16.mxu0 %v2379_v9 }
 0x2e4   : > { %v1254_v23 = vpack.c.bf16 %v1224_v22, %v1217_v21 }
 0x2e5   : > { %v1233_v0 = vpop.permute.xlu1 %1232 }
 0x2e6   : > { %2198 = vmatpush3.bf16.msra.mxu0 %v1254_v23  ;;  %v1238_v27 = vmul.f32 %v2795_v32, %v1233_v0  ;;  %v829_v0 = vld [vmem:[%s3141_s0] sm:$0xff] }
 0x2e7   : > { %2199 = vmatprep.subr.bf16.mxu0 %v2379_v9 }
 0x2e8   : > { %v1256_v30 = vpack.c.bf16 %v1245_v57, %v1238_v27 }
 0x2e9   : > { %v1247_v56 = vpop.permute.xlu1 %1246 }
 0x2ea   : > { %v1252_v58 = vmul.f32 %v2805_v54, %v1247_v56  ;;  %2200 = vmatpush3.bf16.msra.mxu0 %v1255_v55 }
 0x2eb   : > { %2201 = vmatprep.subr.bf16.mxu0 %v2379_v9 }
 0x2ec   : > { %v1257_v59 = vpack.c.bf16 %v1252_v58, %v1252_v58 }
 0x2ee   : > { %2202 = vmatpush3.bf16.msra.mxu0 %v1256_v30  ;;  %v1267_v61 = vsel %vm1005_vm8, %v1257_v59, 0 }
 0x2ef   : > { %2203 = vmatprep.subr.bf16.mxu0 %v2379_v9 }
 0x2f2   : > { %2204 = vmatpush3.bf16.msra.mxu0 %v1267_v61  ;;  %v1261_v24 = vpop.permute.xlu0 %1260 }
 0x2f3   : > { %2209 = vmatprep.subr.bf16.mxu0 %v2379_v9 }
 0x2f5   : > { %2206 = vmatmul.mubr.msk.bf16.vlgmr.msra.gmra.mrb[4].mxu0 %vm1001_vm9, %v834_v62 }
 0x2f6   : > { %2210 = vmatpush3.bf16.msra.mxu0 %v1368_v63  ;;  %2211 = vmatprep.mubr.msk.bf16.mxu0 %vm2385_vm10, %v2379_v9 }
 0x2f7   : > { %2215 = vmatprep.subr.bf16.mxu0 %v2379_v9 }
 0x2fa   : > { %v1361_v17 = vpop.permute.xlu1 %1360 }
 0x2fb   : > { %v2313_v19 = vadd.f32 %v1361_v17, %v1261_v24 }
 0x301   : > { %2212 = vmatmul.mubr.msk.bf16.vlgmr.msra.gmra.mrb[4].mxu0 %vm1363_vm11, %v836_v2 }
 0x302   : > { %2225 = vmatprep.mubr.msk.bf16.mxu0 %vm2385_vm10, %v2379_v9 }
 0x3d4   : > { %v1404_v25 = vpop.f32.mrb[4].mxu0 }
 0x3d5   : > { %v2314_v26 = vadd.f32 %v2313_v19, %v1404_v25  ;;  %v2213_v28 = vpop.f32.mrb[5].mxu0 }
 0x3d6   : > { %v1407_v29 = vpop.f32.mrb[6].mxu0 }
 0x3d7   : > { %v2829_v31 = vmax.f32 %v2314_v26, 0.0  ;;  %v2214_v34 = vpop.f32.mrb[7].mxu0 }
 0x3d9   : > { %1415 = vrot.lane.b32.xlu1 %v2829_v31, %s3115_s6  ;;  %1412 = vrot.lane.b32.xlu0 %v2829_v31, %s2381_s10 }
 0x3dd   : > { %1421 = vrot.lane.b32.xlu1 %v2829_v31, %s3133_s8  ;;  %1418 = vrot.lane.b32.xlu0 %v2829_v31, %s3138_s1 }
 0x3e1   : > { %1427 = vrot.lane.b32.xlu1 %v2829_v31, %s2384_s9  ;;  %1424 = vrot.lane.b32.xlu0 %v2829_v31, %s3139_s4 }
 0x3e5   : > { %1433 = vrot.lane.b32.xlu1 %v2829_v31, %s2386_s30  ;;  %1430 = vrot.lane.b32.xlu0 %v2829_v31, %s3140_s29 }
 0x3e9   : > { %1443 = vperm.xlu0 %2344, %v837_v35  }
 0x44b   : > { %v1416_v36 = vpop.permute.xlu1 %1415  ;;  %v1413_v37 = vpop.permute.xlu0 %1412 }
 0x44c   : > { %v1417_v3 = vmul.f32 %v1416_v36, %v2775_v42  ;;  %v1414_v4 = vmul.f32 %v1413_v37, %v2778_v43  ;;  %v840_v37 = vld [vmem:[%s3090_s15] sm:$0xf] }
 0x44e   : > { %v1436_v5 = vpack.c.bf16 %v1417_v3, %v1414_v4 }
 0x44f   : > { %v1422_v6 = vpop.permute.xlu1 %1421  ;;  %v1419_v7 = vpop.permute.xlu0 %1418 }
 0x450   : > { %v1423_v8 = vmul.f32 %v1422_v6, %v2784_v48  ;;  %v1420_v10 = vmul.f32 %v1419_v7, %v2781_v47  ;;  %2216 = vmatpush3.bf16.msra.mxu0 %v1436_v5 }
 0x451   : > { %2217 = vmatprep.subr.bf16.mxu0 %v2379_v9 }
 0x452   : > { %v1437_v11 = vpack.c.bf16 %v1423_v8, %v1420_v10 }
 0x453   : > { %v1428_v12 = vpop.permute.xlu1 %1427  ;;  %v1425_v13 = vpop.permute.xlu0 %1424 }
 0x454   : > { %v1426_v14 = vmul.f32 %v1425_v13, %v2789_v51  ;;  %2218 = vmatpush3.bf16.msra.mxu0 %v1437_v11  ;;  %v1429_v18 = vmul.f32 %v1428_v12, %v2795_v32  ;;  %v830_v13 = vld [vmem:[%s3142_s2] sm:$0xf] }
 0x455   : > { %2219 = vmatprep.subr.bf16.mxu0 %v2379_v9 }
 0x456   : > { %v1438_v15 = vpack.c.bf16 %v1426_v14, %v2829_v31 }
 0x457   : > { %v1434_v16 = vpop.permute.xlu1 %1433  ;;  %v1431_v39 = vpop.permute.xlu0 %1430 }
 0x458   : > { %v1435_v40 = vmul.f32 %v2805_v54, %v1434_v16  ;;  %v1432_v41 = vmul.f32 %v1431_v39, %v2799_v46  ;;  %2220 = vmatpush3.bf16.msra.mxu0 %v1438_v15 }
 0x459   : > { %2221 = vmatprep.subr.bf16.mxu0 %v2379_v9 }
 0x45a   : > { %v1439_v44 = vpack.c.bf16 %v1432_v41, %v1429_v18  ;;  %v1440_v45 = vpack.c.bf16 %v1435_v40, %v1435_v40 }
 0x45c   : > { %2222 = vmatpush3.bf16.msra.mxu0 %v1439_v44  ;;  %v1450_v49 = vsel %vm1005_vm8, %v1440_v45, 0  ;;  %v843_v44 = vld [vmem:[%s3093_s18] sm:$0xff] }
 0x45d   : > { %2223 = vmatprep.subr.bf16.mxu0 %v2379_v9 }
 0x460   : > { %2224 = vmatpush3.bf16.msra.mxu0 %v1450_v49 }
 0x461   : > { %2243 = vmatprep.subr.bf16.mxu0 %v2379_v9 }
 0x463   : > { %2226 = vmatmul.mubr.msk.bf16.vlgmr.msra.gmra.mrb[8].mxu0 %vm1001_vm9, %v838_v50 }
 0x464   : > { %2245 = vmatprep.mubr.msk.bf16.mxu0 %vm2385_vm10, %v2379_v9 }
 0x468   : > { %v1444_v20 = vpop.permute.xlu0 %1443 }
 0x536   : > { %v1486_v52 = vpop.f32.mrb[8].mxu0 }
 0x537   : > { %v1487_v53 = vadd.f32 %v1486_v52, %v1444_v20  ;;  %v2227_v21 = vpop.f32.mrb[9].mxu0 }
 0x538   : > { %v1489_v22 = vpop.f32.mrb[10].mxu0 }
 0x539   : > { %v1492_v33 = vmax.f32 %v1487_v53, 0.0  ;;  %v2228_v23 = vpop.f32.mrb[11].mxu0 }
 0x53b   : > { %1496 = vrot.lane.b32.xlu0 %v1492_v33, %s3115_s6  ;;  %1493 = vrot.lane.b32.xlu1 %v1492_v33, %s2381_s10 }
 0x53f   : > { %1502 = vrot.lane.b32.xlu0 %v1492_v33, %s3133_s8  ;;  %1499 = vrot.lane.b32.xlu1 %v1492_v33, %s3138_s1 }
 0x543   : > { %1508 = vrot.lane.b32.xlu0 %v1492_v33, %s2384_s9  ;;  %1505 = vrot.lane.b32.xlu1 %v1492_v33, %s3139_s4 }
 0x547   : > { %1514 = vrot.lane.b32.xlu0 %v1492_v33, %s2386_s30  ;;  %1511 = vrot.lane.b32.xlu1 %v1492_v33, %s3140_s29 }
 0x54b   : > { %1578 = vperm.xlu0 %2344, %v829_v0   ;;  %1524 = vperm.xlu1 %2345, %v839_v1  }
 0x5ad   : > { %v1497_v55 = vpop.permute.xlu0 %1496  ;;  %v1494_v27 = vpop.permute.xlu1 %1493 }
 0x5ae   : > { %v1498_v56 = vmul.f32 %v1497_v55, %v2775_v42  ;;  %v1495_v57 = vmul.f32 %v1494_v27, %v2778_v43 }
 0x5b0   : > { %v1517_v58 = vpack.c.bf16 %v1498_v56, %v1495_v57 }
 0x5b1   : > { %v1503_v30 = vpop.permute.xlu0 %1502  ;;  %v1500_v59 = vpop.permute.xlu1 %1499 }
 0x5b2   : > { %v1504_v60 = vmul.f32 %v1503_v30, %v2784_v48  ;;  %v1501_v61 = vmul.f32 %v1500_v59, %v2781_v47  ;;  %2230 = vmatpush3.bf16.msra.mxu1 %v1517_v58 }
 0x5b3   : > { %2231 = vmatprep.subr.bf16.mxu1 %v2379_v9 }
 0x5b4   : > { %v1518_v62 = vpack.c.bf16 %v1504_v60, %v1501_v61 }
 0x5b5   : > { %v1509_v63 = vpop.permute.xlu0 %1508  ;;  %v1506_v2 = vpop.permute.xlu1 %1505 }
 0x5b6   : > { %v1507_v17 = vmul.f32 %v1506_v2, %v2789_v51  ;;  %2232 = vmatpush3.bf16.msra.mxu1 %v1518_v62  ;;  %v1510_v26 = vmul.f32 %v1509_v63, %v2795_v32  ;;  %v844_v63 = vld [vmem:[%s3094_s19] sm:$0xf] }
 0x5b7   : > { %2233 = vmatprep.subr.bf16.mxu1 %v2379_v9 }
 0x5b8   : > { %v1519_v24 = vpack.c.bf16 %v1507_v17, %v1492_v33 }
 0x5b9   : > { %v1515_v19 = vpop.permute.xlu0 %1514  ;;  %v1512_v25 = vpop.permute.xlu1 %1511 }
 0x5ba   : > { %v1516_v28 = vmul.f32 %v2805_v54, %v1515_v19  ;;  %v1513_v29 = vmul.f32 %v1512_v25, %v2799_v46  ;;  %2234 = vmatpush3.bf16.msra.mxu1 %v1519_v24 }
 0x5bb   : > { %2235 = vmatprep.subr.bf16.mxu1 %v2379_v9 }
 0x5bc   : > { %v1520_v34 = vpack.c.bf16 %v1513_v29, %v1510_v26  ;;  %v1521_v35 = vpack.c.bf16 %v1516_v28, %v1516_v28  ;;  %v845_v29 = vld [vmem:[%s3095_s20] sm:$0xff] }
 0x5be   : > { %2236 = vmatpush3.bf16.msra.mxu1 %v1520_v34  ;;  %v1531_v36 = vsel %vm1005_vm8, %v1521_v35, 0 }
 0x5bf   : > { %2237 = vmatprep.subr.bf16.mxu1 %v2379_v9 }
 0x5c2   : > { %2238 = vmatpush3.bf16.msra.mxu1 %v1531_v36 }
 0x5c3   : > { %2263 = vmatprep.subr.bf16.mxu1 %v2379_v9 }
 0x5c5   : > { %2240 = vmatmul.mubr.msk.bf16.vlgmr.msra.gmra.mrb[8].mxu1 %vm1001_vm9, %v840_v37 }
 0x5c6   : > { %2273 = vmatprep.mubr.msk.bf16.mxu1 %vm2385_vm10, %v2379_v9 }
 0x5ca   : > { %v1525_v3 = vpop.permute.xlu1 %1524  ;;  %v1579_v14 = vpop.permute.xlu0 %1578 }
 0x698   : > { %v1567_v4 = vpop.f32.mrb[8].mxu1 }
 0x699   : > { %v1568_v5 = vadd.f32 %v1567_v4, %v1525_v3  ;;  %v2241_v6 = vpop.f32.mrb[9].mxu1 }
 0x69a   : > { %v1570_v7 = vpop.f32.mrb[10].mxu1 }
 0x69b   : > { %v1573_v8 = vadd.f32 %v1568_v5, %v2829_v31  ;;  %v2242_v10 = vpop.f32.mrb[11].mxu1 }
 0x69d   : > { %v1574_v11 = vmax.f32 %v1573_v8, 0.0 }
 0x69f   : > { %v1575_v12 = vpack.c.bf16 %v2829_v31, %v1574_v11 }
 0x6a1   : > { %2244 = vmatpush3.bf16.msra.mxu0 %v1575_v12 }
 0x6a2   : > { %2249 = vmatprep.subr.bf16.mxu0 %v2379_v9 }
 0x6a4   : > { %2246 = vmatmul.mubr.msk.bf16.vlgmr.msra.gmra.mrb[12].mxu0 %vm1581_vm12, %v830_v13 }
 0x6a5   : > { %2259 = vmatprep.mubr.msk.bf16.mxu0 %vm2385_vm10, %v2379_v9 }
 0x777   : > { %v1619_v15 = vpop.f32.mrb[12].mxu0 }
 0x778   : > { %v1620_v16 = vadd.f32 %v1619_v15, %v1579_v14  ;;  %v2247_v39 = vpop.f32.mrb[13].mxu0 }
 0x779   : > { %v1622_v18 = vpop.f32.mrb[14].mxu0 }
 0x77a   : > { %v1625_v40 = vadd.f32 %v1620_v16, %v1574_v11  ;;  %v2248_v41 = vpop.f32.mrb[15].mxu0 }
 0x77c   : > { %v2913_v31 = vmax.f32 %v1625_v40, 0.0 }
 0x77e   : > { %1630 = vrot.lane.b32.xlu0 %v2913_v31, %s3143_s7  ;;  %1627 = vrot.lane.b32.xlu1 %v2913_v31, %s2381_s10 }
 0x782   : > { %1636 = vrot.lane.b32.xlu0 %v2913_v31, %s3133_s8  ;;  %1633 = vrot.lane.b32.xlu1 %v2913_v31, %s3138_s1 }
 0x786   : > { %1642 = vrot.lane.b32.xlu0 %v2913_v31, %s2384_s9  ;;  %1639 = vrot.lane.b32.xlu1 %v2913_v31, %s3139_s4 }
 0x78a   : > { %1648 = vrot.lane.b32.xlu0 %v2913_v31, %s2386_s30  ;;  %1645 = vrot.lane.b32.xlu1 %v2913_v31, %s3140_s29 }
 0x78e   : > { %1658 = vperm.xlu1 %2345, %v843_v44  }
 0x7f0   : > { %v1631_v45 = vpop.permute.xlu0 %1630  ;;  %v1628_v49 = vpop.permute.xlu1 %1627 }
 0x7f1   : > { %v1632_v50 = vmul.f32 %v1631_v45, %v2775_v42  ;;  %v1629_v20 = vmul.f32 %v1628_v49, %v2778_v43  ;;  %v846_v45 = vld [vmem:[%s3096_s21] sm:$0xf] }
 0x7f3   : > { %v1651_v52 = vpack.c.bf16 %v1632_v50, %v1629_v20 }
 0x7f4   : > { %v1637_v53 = vpop.permute.xlu0 %1636  ;;  %v1634_v21 = vpop.permute.xlu1 %1633 }
 0x7f5   : > { %v1638_v22 = vmul.f32 %v1637_v53, %v2784_v48  ;;  %v1635_v33 = vmul.f32 %v1634_v21, %v2781_v47  ;;  %2250 = vmatpush3.bf16.msra.mxu0 %v1651_v52 }
 0x7f6   : > { %2251 = vmatprep.subr.bf16.mxu0 %v2379_v9 }
 0x7f7   : > { %v1652_v23 = vpack.c.bf16 %v1638_v22, %v1635_v33 }
 0x7f8   : > { %v1643_v0 = vpop.permute.xlu0 %1642  ;;  %v1640_v1 = vpop.permute.xlu1 %1639 }
 0x7f9   : > { %v1641_v55 = vmul.f32 %v1640_v1, %v2789_v51  ;;  %2252 = vmatpush3.bf16.msra.mxu0 %v1652_v23  ;;  %v1644_v58 = vmul.f32 %v1643_v0, %v2795_v32  ;;  %v847_v23 = vld [vmem:[%s3097_s22] sm:$0xff] }
 0x7fa   : > { %2253 = vmatprep.subr.bf16.mxu0 %v2379_v9 }
 0x7fb   : > { %v1653_v27 = vpack.c.bf16 %v1641_v55, %v2913_v31 }
 0x7fc   : > { %v1649_v56 = vpop.permute.xlu0 %1648  ;;  %v1646_v57 = vpop.permute.xlu1 %1645 }
 0x7fd   : > { %v1650_v30 = vmul.f32 %v2805_v54, %v1649_v56  ;;  %v1647_v59 = vmul.f32 %v1646_v57, %v2799_v46  ;;  %2254 = vmatpush3.bf16.msra.mxu0 %v1653_v27 }
 0x7fe   : > { %2255 = vmatprep.subr.bf16.mxu0 %v2379_v9 }
 0x7ff   : > { %v1654_v60 = vpack.c.bf16 %v1647_v59, %v1644_v58  ;;  %v1655_v61 = vpack.c.bf16 %v1650_v30, %v1650_v30 }
 0x801   : > { %2256 = vmatpush3.bf16.msra.mxu0 %v1654_v60  ;;  %v1665_v62 = vsel %vm1005_vm8, %v1655_v61, 0 }
 0x802   : > { %2257 = vmatprep.subr.bf16.mxu0 %v2379_v9 }
 0x805   : > { %2258 = vmatpush3.bf16.msra.mxu0 %v1665_v62 }
 0x806   : > { %2277 = vmatprep.subr.bf16.mxu0 %v2379_v9 }
 0x808   : > { %2260 = vmatmul.mubr.msk.bf16.vlgmr.msra.gmra.mrb[16].mxu0 %vm1001_vm9, %v844_v63 }
 0x809   : > { %2287 = vmatprep.mubr.msk.bf16.mxu0 %vm2385_vm10, %v2379_v9 }
 0x80d   : > { %v1659_v2 = vpop.permute.xlu1 %1658 }
 0x8db   : > { %v1701_v17 = vpop.f32.mrb[16].mxu0 }
 0x8dc   : > { %v1702_v24 = vadd.f32 %v1701_v17, %v1659_v2  ;;  %v2261_v19 = vpop.f32.mrb[17].mxu0 }
 0x8dd   : > { %v1704_v25 = vpop.f32.mrb[18].mxu0 }
 0x8de   : > { %v1707_v26 = vmax.f32 %v1702_v24, 0.0  ;;  %v2262_v28 = vpop.f32.mrb[19].mxu0 }
 0x8e0   : > { %1711 = vrot.lane.b32.xlu1 %v1707_v26, %s3143_s7  ;;  %1708 = vrot.lane.b32.xlu0 %v1707_v26, %s2381_s10 }
 0x8e4   : > { %1717 = vrot.lane.b32.xlu1 %v1707_v26, %s3133_s8  ;;  %1714 = vrot.lane.b32.xlu0 %v1707_v26, %s3138_s1 }
 0x8e8   : > { %1723 = vrot.lane.b32.xlu1 %v1707_v26, %s2384_s9  ;;  %1720 = vrot.lane.b32.xlu0 %v1707_v26, %s3139_s4 }
 0x8ec   : > { %1729 = vrot.lane.b32.xlu1 %v1707_v26, %s2386_s30  ;;  %1726 = vrot.lane.b32.xlu0 %v1707_v26, %s3140_s29 }
 0x8f0   : > { %1739 = vperm.xlu0 %2344, %v845_v29  }
 0x952   : > { %v1712_v34 = vpop.permute.xlu1 %1711  ;;  %v1709_v35 = vpop.permute.xlu0 %1708 }
 0x953   : > { %v1713_v36 = vmul.f32 %v1712_v34, %v2775_v42  ;;  %v1710_v37 = vmul.f32 %v1709_v35, %v2778_v43  ;;  %v848_v35 = vld [vmem:[%s3098_s23] sm:$0xf] }
 0x955   : > { %v1732_v3 = vpack.c.bf16 %v1713_v36, %v1710_v37 }
 0x956   : > { %v1718_v4 = vpop.permute.xlu1 %1717  ;;  %v1715_v5 = vpop.permute.xlu0 %1714 }
 0x957   : > { %v1719_v6 = vmul.f32 %v1718_v4, %v2784_v48  ;;  %v1716_v7 = vmul.f32 %v1715_v5, %v2781_v47  ;;  %2264 = vmatpush3.bf16.msra.mxu1 %v1732_v3 }
 0x958   : > { %2265 = vmatprep.subr.bf16.mxu1 %v2379_v9 }
 0x959   : > { %v1733_v8 = vpack.c.bf16 %v1719_v6, %v1716_v7 }
 0x95a   : > { %v1724_v10 = vpop.permute.xlu1 %1723  ;;  %v1721_v11 = vpop.permute.xlu0 %1720 }
 0x95b   : > { %v1722_v12 = vmul.f32 %v1721_v11, %v2789_v51  ;;  %2266 = vmatpush3.bf16.msra.mxu1 %v1733_v8  ;;  %v1725_v16 = vmul.f32 %v1724_v10, %v2795_v32  ;;  %v841_v8 = vld [vmem:[%s3091_s16] sm:$0xff] }
 0x95c   : > { %2267 = vmatprep.subr.bf16.mxu1 %v2379_v9  ;;  %v849_v10 = vld [vmem:[%s3099_s24] sm:$0xff] }
 0x95d   : > { %v1734_v13 = vpack.c.bf16 %v1722_v12, %v1707_v26 }
 0x95e   : > { %v1730_v14 = vpop.permute.xlu1 %1729  ;;  %v1727_v15 = vpop.permute.xlu0 %1726 }
 0x95f   : > { %v1731_v39 = vmul.f32 %v2805_v54, %v1730_v14  ;;  %v1728_v18 = vmul.f32 %v1727_v15, %v2799_v46  ;;  %2268 = vmatpush3.bf16.msra.mxu1 %v1734_v13 }
 0x960   : > { %2269 = vmatprep.subr.bf16.mxu1 %v2379_v9 }
 0x961   : > { %v1735_v40 = vpack.c.bf16 %v1728_v18, %v1725_v16  ;;  %v1736_v41 = vpack.c.bf16 %v1731_v39, %v1731_v39 }
 0x963   : > { %2270 = vmatpush3.bf16.msra.mxu1 %v1735_v40  ;;  %v1746_v44 = vsel %vm1005_vm8, %v1736_v41, 0 }
 0x964   : > { %2271 = vmatprep.subr.bf16.mxu1 %v2379_v9 }
 0x967   : > { %2272 = vmatpush3.bf16.msra.mxu1 %v1746_v44 }
 0x968   : > { %2291 = vmatprep.subr.bf16.mxu1 %v2379_v9 }
 0x96a   : > { %2274 = vmatmul.mubr.msk.bf16.vlgmr.msra.gmra.mrb[12].mxu1 %vm1001_vm9, %v846_v45 }
 0x96b   : > { %2301 = vmatprep.mubr.msk.bf16.mxu1 %vm2385_vm10, %v2379_v9 }
 0x96f   : > { %v1740_v49 = vpop.permute.xlu0 %1739 }
 0xa3d   : > { %v1782_v50 = vpop.f32.mrb[12].mxu1 }
 0xa3e   : > { %v1783_v20 = vadd.f32 %v1782_v50, %v1740_v49  ;;  %v2275_v52 = vpop.f32.mrb[13].mxu1 }
 0xa3f   : > { %v1785_v53 = vpop.f32.mrb[14].mxu1 }
 0xa40   : > { %v1788_v21 = vadd.f32 %v1783_v20, %v2913_v31  ;;  %v2276_v22 = vpop.f32.mrb[15].mxu1 }
 0xa42   : > { %v2987_v33 = vmax.f32 %v1788_v21, 0.0  ;;  %v850_v21 = vld [vmem:[%s3100_s25] sm:$0xf] }
 0xa44   : > { %1793 = vrot.lane.b32.xlu0 %v2987_v33, %s3143_s7  ;;  %1790 = vrot.lane.b32.xlu1 %v2987_v33, %s2381_s10 }
 0xa48   : > { %1799 = vrot.lane.b32.xlu0 %v2987_v33, %s3133_s8  ;;  %1796 = vrot.lane.b32.xlu1 %v2987_v33, %s3138_s1 }
 0xa4c   : > { %1805 = vrot.lane.b32.xlu0 %v2987_v33, %s2384_s9  ;;  %1802 = vrot.lane.b32.xlu1 %v2987_v33, %s3139_s4 }
 0xa50   : > { %1811 = vrot.lane.b32.xlu0 %v2987_v33, %s2386_s30  ;;  %1808 = vrot.lane.b32.xlu1 %v2987_v33, %s3140_s29 }
 0xa54   : > { %1821 = vperm.xlu1 %2345, %v847_v23  }
 0xab6   : > { %v1794_v0 = vpop.permute.xlu0 %1793  ;;  %v1791_v1 = vpop.permute.xlu1 %1790 }
 0xab7   : > { %v1795_v55 = vmul.f32 %v1794_v0, %v2775_v42  ;;  %v1792_v27 = vmul.f32 %v1791_v1, %v2778_v43 }
 0xab9   : > { %v1814_v56 = vpack.c.bf16 %v1795_v55, %v1792_v27 }
 0xaba   : > { %v1800_v57 = vpop.permute.xlu0 %1799  ;;  %v1797_v58 = vpop.permute.xlu1 %1796 }
 0xabb   : > { %v1801_v30 = vmul.f32 %v1800_v57, %v2784_v48  ;;  %v1798_v59 = vmul.f32 %v1797_v58, %v2781_v47  ;;  %2278 = vmatpush3.bf16.msra.mxu0 %v1814_v56  ;;  %v1954_v56 = vpack.c.bf16 %v2913_v31, %v2769_v38  ;;  %v842_v57 = vld [vmem:[%s3092_s17] sm:$0xf] }
 0xabc   : > { %2279 = vmatprep.subr.bf16.mxu0 %v2379_v9 }
 0xabd   : > { %v1815_v60 = vpack.c.bf16 %v1801_v30, %v1798_v59 }
 0xabe   : > { %v1806_v61 = vpop.permute.xlu0 %1805  ;;  %v1803_v62 = vpop.permute.xlu1 %1802 }
 0xabf   : > { %v1804_v63 = vmul.f32 %v1803_v62, %v2789_v51  ;;  %2280 = vmatpush3.bf16.msra.mxu0 %v1815_v60  ;;  %v1807_v19 = vmul.f32 %v1806_v61, %v2795_v32 }
 0xac0   : > { %2281 = vmatprep.subr.bf16.mxu0 %v2379_v9 }
 0xac1   : > { %v1816_v2 = vpack.c.bf16 %v1804_v63, %v2987_v33 }
 0xac2   : > { %v1812_v17 = vpop.permute.xlu0 %1811  ;;  %v1809_v24 = vpop.permute.xlu1 %1808 }
 0xac3   : > { %v1813_v25 = vmul.f32 %v2805_v54, %v1812_v17  ;;  %v1810_v26 = vmul.f32 %v1809_v24, %v2799_v46  ;;  %2282 = vmatpush3.bf16.msra.mxu0 %v1816_v2 }
 0xac4   : > { %2283 = vmatprep.subr.bf16.mxu0 %v2379_v9 }
 0xac5   : > { %v1817_v28 = vpack.c.bf16 %v1810_v26, %v1807_v19  ;;  %v1818_v29 = vpack.c.bf16 %v1813_v25, %v1813_v25 }
 0xac7   : > { %2284 = vmatpush3.bf16.msra.mxu0 %v1817_v28  ;;  %v1828_v34 = vsel %vm1005_vm8, %v1818_v29, 0 }
 0xac8   : > { %2285 = vmatprep.subr.bf16.mxu0 %v2379_v9 }
 0xacb   : > { %2286 = vmatpush3.bf16.msra.mxu0 %v1828_v34 }
 0xacc   : > { %2305 = vmatprep.subr.bf16.mxu0 %v2379_v9 }
 0xace   : > { %2288 = vmatmul.mubr.msk.bf16.vlgmr.msra.gmra.mrb[20].mxu0 %vm1001_vm9, %v848_v35 }
 0xacf   : > { %2309 = vmatprep.mubr.msk.bf16.mxu0 %vm2385_vm10, %v2379_v9 }
 0xad3   : > { %v1822_v36 = vpop.permute.xlu1 %1821 }
 0xba1   : > { %v1864_v37 = vpop.f32.mrb[20].mxu0 }
 0xba2   : > { %v1865_v3 = vadd.f32 %v1864_v37, %v1822_v36  ;;  %v2289_v4 = vpop.f32.mrb[21].mxu0 }
 0xba3   : > { %v1867_v5 = vpop.f32.mrb[22].mxu0 }
 0xba4   : > { %v1870_v6 = vmax.f32 %v1865_v3, 0.0  ;;  %v2290_v7 = vpop.f32.mrb[23].mxu0 }
 0xba6   : > { %1874 = vrot.lane.b32.xlu1 %v1870_v6, %s3143_s7  ;;  %1871 = vrot.lane.b32.xlu0 %v1870_v6, %s2381_s10 }
 0xbaa   : > { %1880 = vrot.lane.b32.xlu1 %v1870_v6, %s3133_s8  ;;  %1877 = vrot.lane.b32.xlu0 %v1870_v6, %s3138_s1  ;;  %s2067_s1 = sshll.u32 %s3145_s3, 3 }
 0xbab   : > { %s789_s2 = scalar_lea.vmem %s3101_s26, %s2067_s1 }
 0xbae   : > { %1886 = vrot.lane.b32.xlu1 %v1870_v6, %s2384_s9  ;;  %1883 = vrot.lane.b32.xlu0 %v1870_v6, %s3139_s4 }
 0xbb2   : > { %1892 = vrot.lane.b32.xlu1 %v1870_v6, %s2386_s30  ;;  %1889 = vrot.lane.b32.xlu0 %v1870_v6, %s3140_s29 }
 0xbb6   : > { %1957 = vperm.xlu1 %2345, %v841_v8   ;;  %1902 = vperm.xlu0 %2344, %v849_v10  }
 0xc18   : > { %v1875_v11 = vpop.permute.xlu1 %1874  ;;  %v1872_v12 = vpop.permute.xlu0 %1871 }
 0xc19   : > { %v1876_v13 = vmul.f32 %v1875_v11, %v2775_v42  ;;  %v1873_v14 = vmul.f32 %v1872_v12, %v2778_v43 }
 0xc1b   : > { %v1895_v15 = vpack.c.bf16 %v1876_v13, %v1873_v14 }
 0xc1c   : > { %v1881_v16 = vpop.permute.xlu1 %1880  ;;  %v1878_v39 = vpop.permute.xlu0 %1877 }
 0xc1d   : > { %v1882_v18 = vmul.f32 %v1881_v16, %v2784_v48  ;;  %v1879_v40 = vmul.f32 %v1878_v39, %v2781_v47  ;;  %2292 = vmatpush3.bf16.msra.mxu1 %v1895_v15 }
 0xc1e   : > { %2293 = vmatprep.subr.bf16.mxu1 %v2379_v9 }
 0xc1f   : > { %v1896_v41 = vpack.c.bf16 %v1882_v18, %v1879_v40 }
 0xc20   : > { %v1887_v44 = vpop.permute.xlu1 %1886  ;;  %v1884_v45 = vpop.permute.xlu0 %1883 }
 0xc21   : > { %v1885_v49 = vmul.f32 %v1884_v45, %v2789_v51  ;;  %2294 = vmatpush3.bf16.msra.mxu1 %v1896_v41  ;;  %v1888_v20 = vmul.f32 %v1887_v44, %v2795_v32 }
 0xc22   : > { %2295 = vmatprep.subr.bf16.mxu1 %v2379_v9 }
 0xc23   : > { %v1897_v42 = vpack.c.bf16 %v1885_v49, %v1870_v6 }
 0xc24   : > { %v1893_v43 = vpop.permute.xlu1 %1892  ;;  %v1890_v50 = vpop.permute.xlu0 %1889 }
 0xc25   : > { %v1894_v48 = vmul.f32 %v2805_v54, %v1893_v43  ;;  %v1891_v47 = vmul.f32 %v1890_v50, %v2799_v46  ;;  %2296 = vmatpush3.bf16.msra.mxu1 %v1897_v42 }
 0xc26   : > { %2297 = vmatprep.subr.bf16.mxu1 %v2379_v9 }
 0xc27   : > { %v1898_v52 = vpack.c.bf16 %v1891_v47, %v1888_v20  ;;  %v1899_v53 = vpack.c.bf16 %v1894_v48, %v1894_v48 }
 0xc29   : > { %2298 = vmatpush3.bf16.msra.mxu1 %v1898_v52  ;;  %v1909_v51 = vsel %vm1005_vm8, %v1899_v53, 0 }
 0xc2a   : > { %2299 = vmatprep.subr.bf16.mxu1 %v2379_v9 }
 0xc2d   : > { %2300 = vmatpush3.bf16.msra.mxu1 %v1909_v51 }
 0xc30   : > { %2302 = vmatmul.mubr.msk.bf16.vlgmr.msra.gmra.mrb[16].mxu1 %vm1001_vm9, %v850_v21 }
 0xc35   : > { %v1903_v32 = vpop.permute.xlu0 %1902  ;;  %v1958_v58 = vpop.permute.xlu1 %1957 }
 0xd03   : > { %v1945_v54 = vpop.f32.mrb[16].mxu1 }
 0xd04   : > { %v1946_v46 = vadd.f32 %v1945_v54, %v1903_v32  ;;  %v2303_v22 = vpop.f32.mrb[17].mxu1 }
 0xd05   : > { %v1948_v23 = vpop.f32.mrb[18].mxu1 }
 0xd06   : > { %v1951_v0 = vadd.f32 %v1946_v46, %v2987_v33  ;;  %v2304_v1 = vpop.f32.mrb[19].mxu1 }
 0xd08   : > { %v1952_v55 = vmax.f32 %v1951_v0, 0.0 }
 0xd0a   : > { %v1953_v27 = vpack.c.bf16 %v2987_v33, %v1952_v55 }
 0xd0c   : > { %2306 = vmatpush3.bf16.msra.mxu0 %v1953_v27 }
 0xd0d   : > { %2307 = vmatprep.subr.bf16.mxu0 %v2379_v9 }
 0xd10   : > { %2308 = vmatpush3.bf16.msra.mxu0 %v1954_v56 }
 0xd13   : > { %2310 = vmatmul.mubr.msk.bf16.vlgmr.msra.gmra.mrb[24].mxu0 %vm1960_vm13, %v842_v57 }
 0xde6   : > { %v1998_v30 = vpop.f32.mrb[24].mxu0 }
 0xde7   : > { %v1999_v59 = vadd.f32 %v1998_v30, %v1958_v58  ;;  %v2311_v60 = vpop.f32.mrb[25].mxu0 }
 0xde8   : > { %v2001_v61 = vpop.f32.mrb[26].mxu0 }
 0xde9   : > { %v2004_v33 = vadd.f32 %v1999_v59, %v1952_v55  ;;  %v2312_v62 = vpop.f32.mrb[27].mxu0 }
 0xdeb   : > { %v2005_v9 = vmax.f32 %v2004_v33, 0.0 }
 0xded   : > { %2006 = vst [vmem:[%s789_s2] sm:$0xff] %v2005_v9 }
 0xdee PF: > { %s36_s27 = sadd.s32 1, %s2368_s27  }
 0xdef   : > { %p33_p4 = scmp.ge.s32.totalorder %s36_s27, 4  }
 0xdf1   :  { %35 = sbr.rel (!%p33_p4) target bundleno = 12 (0xc), region = 154 }

</bundles_post_ra>
